<compile_context>
chip_gen: v7x
topology: tpu7x:2x2x1
jax: 0.10.0
libtpu: 0.0.40
codegen_flags: <defaults>
</compile_context>

<pallas_src>
import functools

import jax
import jax.numpy as jnp
from jax.experimental import pallas as pl
from jax.experimental.pallas import tpu as pltpu

_LANE = 128
_VMEM = pl.BlockSpec(memory_space=pltpu.MemorySpace.VMEM)


def _round_up(x, m):
    return (x + m - 1) // m * m


# ----------------------------------------------------------------------------
# Fused forward kernel (embedding gather + stacked bi-LSTM step + MLP head)
# ----------------------------------------------------------------------------
def _make_fused_kernel(*, n_layers, direction, batch, emb_dim, hidden, vocab_pad):
    H = hidden
    HP = _round_up(max(H, _LANE), _LANE)   # padded per-gate width (lane aligned)
    E = emb_dim
    D = direction

    def kernel(tok_ref, emb_ref, h0_ref, c0_ref, w_ref, b_ref, wh_ref, bh_ref,
               out_ref, hcn_ref):
        f32 = jnp.float32

        # --- Embedding lookup: one-hot (B, Vpad) @ (Vpad, E) on the MXU ------
        # (vocab is tiny here; see TODO above for large-vocab row gather.)
        tok = tok_ref[...]                                             # (B, 1) i32
        lanes = jax.lax.broadcasted_iota(jnp.int32, (batch, vocab_pad), 1)
        onehot = (lanes == tok).astype(f32)                            # (B, Vpad)
        x = jnp.dot(onehot, emb_ref[...], preferred_element_type=f32)  # (B, E)

        # --- Stacked (bi-)LSTM, seq_len == 1 ---------------------------------
        # Stacked weight slab row layout (per cell idx), gate cols [i|f|o|g]*HP:
        #   layer 0 :  rows [0,E)   W_ih          rows [E,   E+H)     W_hh
        #   layer>0 :  rows [0,H)   W_ih(fwd in)  rows [H,   2H)      W_ih(bwd in)
        #              rows [D*H, (D+1)*H)  W_hh
        layer_h = None
        for layer in range(n_layers):
            new_h = []
            for d in range(D):
                idx = layer * D + d
                h_prev = h0_ref[idx]                                   # (B, H)
                c_prev = c0_ref[idx]                                   # (B, H)
                if layer == 0:
                    gates = (
                        jnp.dot(x, w_ref[idx, 0:E, :],
                                preferred_element_type=f32)
                        + jnp.dot(h_prev, w_ref[idx, E:E + H, :],
                                  preferred_element_type=f32))
                else:
                    gates = (
                        jnp.dot(layer_h[0], w_ref[idx, 0:H, :],
                                preferred_element_type=f32)
                        + jnp.dot(h_prev, w_ref[idx, D * H:(D + 1) * H, :],
                                  preferred_element_type=f32))
                    if D == 2:
                        gates = gates + jnp.dot(
                            layer_h[1], w_ref[idx, H:2 * H, :],
                            preferred_element_type=f32)
                gates = gates + b_ref[idx]                             # (B, 4*HP)

                # Gate extraction: every slice starts on a 128-lane boundary,
                # one wide sigmoid covers i, f, o; tanh covers only g.
                sig = jax.nn.sigmoid(gates[:, :3 * HP])
                i_g = sig[:, 0:H]
                f_g = sig[:, HP:HP + H]
                o_g = sig[:, 2 * HP:2 * HP + H]
                g_g = jnp.tanh(gates[:, 3 * HP:3 * HP + H])

                c_new = f_g * c_prev + i_g * g_g                       # (B, H)
                h_new = o_g * jnp.tanh(c_new)                          # (B, H)

                # Lane-dense packed store: h in lanes [0, H), c in [H, 2H).
                hcn_ref[idx] = jnp.concatenate([h_new, c_new], axis=-1)
                new_h.append(h_new)
            layer_h = new_h

        # --- Head: Linear -> Dropout(identity) -> Linear ----------------------
        # w1 is split per direction so no lane concat of [h_fwd, h_bwd] is needed.
        mid = jnp.dot(layer_h[0], wh_ref[0], preferred_element_type=f32)
        if D == 2:
            mid = mid + jnp.dot(layer_h[1], wh_ref[1],
                                preferred_element_type=f32)
        mid = mid + bh_ref[0]                                          # (B, 128)
        out_ref[...] = (jnp.dot(mid[:, :H], wh_ref[2],
                                preferred_element_type=f32) + bh_ref[1])

    return kernel


def fused_forward(tok2d, emb_pad, h0, c0, w_lstm, b_lstm, w_head, b_head,
                  *, n_layers, direction):
    n_cells, batch, H = h0.shape
    vocab_pad, emb_dim = emb_pad.shape
    out_lane = w_head.shape[-1]

    kernel = _make_fused_kernel(
        n_layers=n_layers, direction=direction, batch=batch,
        emb_dim=emb_dim, hidden=H, vocab_pad=vocab_pad)

    out_shape = (
        jax.ShapeDtypeStruct((batch, out_lane), jnp.float32),      # padded head out
        jax.ShapeDtypeStruct((n_cells, batch, 2 * H), jnp.float32),  # packed [h|c]
    )
    return pl.pallas_call(
        kernel,
        out_shape=out_shape,
        in_specs=[_VMEM] * 8,
        out_specs=(_VMEM, _VMEM),
    )(tok2d, emb_pad, h0, c0, w_lstm, b_lstm, w_head, b_head)


# ----------------------------------------------------------------------------
# Logical parameters (PyTorch layout, gate order i, f, g, o)
# ----------------------------------------------------------------------------
def init_params(key, vocab, emb_dim, hidden, n_layers, direction, output_size):
    H = hidden
    n_cells = n_layers * direction
    keys = jax.random.split(key, 4 * n_cells + 8)
    k = iter(keys)
    p = {}
    p["embedding"] = jax.random.normal(next(k), (vocab, emb_dim), jnp.float32) * 0.1

    w_ih, w_hh, b = [], [], []
    for layer in range(n_layers):
        din = emb_dim if layer == 0 else H * direction
        for _ in range(direction):
            lim = (6.0 / (din + 4 * H)) ** 0.5
            w_ih.append(jax.random.uniform(next(k), (din, 4 * H), jnp.float32,
                                           -lim, lim))
            w_hh.append(jax.random.normal(next(k), (H, 4 * H), jnp.float32) * 0.05)
            # NOTE: PyTorch's Model._init_weights zeroes LSTM biases; small
            # nonzero values are used here only so the bias path is exercised.
            b.append(jax.random.uniform(next(k), (4 * H,), jnp.float32, -0.05, 0.05))
    p["w_ih"], p["w_hh"], p["b"] = w_ih, w_hh, b

    d1 = H * direction
    p["w1"] = jax.random.normal(next(k), (d1, H), jnp.float32) * (1.0 / d1 ** 0.5)
    p["b1"] = jax.random.uniform(next(k), (H,), jnp.float32, -0.05, 0.05)
    p["w2"] = jax.random.normal(next(k), (H, output_size), jnp.float32) * (1.0 / H ** 0.5)
    p["b2"] = jax.random.uniform(next(k), (output_size,), jnp.float32, -0.05, 0.05)
    return p


# ----------------------------------------------------------------------------
# Pack logical parameters into the kernel's stacked / padded layout
# ----------------------------------------------------------------------------
def pack_params(p, *, vocab, emb_dim, hidden, n_layers, direction):
    H = hidden
    assert emb_dim % 8 == 0 and H % 8 == 0, "sublane-aligned dims expected"
    HP = _round_up(max(H, _LANE), _LANE)
    vocab_pad = _round_up(vocab, _LANE)

    def pad_gates(w):
        # (..., 4H) in PyTorch order [i|f|g|o] -> (..., 4*HP) in order [i|f|o|g],
        # each gate zero-padded to a full 128-lane block.
        i_, f_, g_, o_ = jnp.split(w, 4, axis=-1)
        pad = [(0, 0)] * (w.ndim - 1) + [(0, HP - H)]
        return jnp.concatenate(
            [jnp.pad(i_, pad), jnp.pad(f_, pad), jnp.pad(o_, pad), jnp.pad(g_, pad)],
            axis=-1)

    # Embedding table, row-padded so the one-hot contraction dim is 128-aligned.
    emb = jnp.zeros((vocab_pad, emb_dim), jnp.float32).at[:vocab].set(p["embedding"])

    # All LSTM cell weights -> ONE (n_cells, K_max, 4*HP) array (1 DMA),
    # all biases -> ONE (n_cells, 1, 4*HP) array.
    k_rows = [emb_dim + H if l == 0 else (direction + 1) * H
              for l in range(n_layers) for _ in range(direction)]
    k_max = max(k_rows)
    w_slabs, b_slabs = [], []
    for layer in range(n_layers):
        for d in range(direction):
            idx = layer * direction + d
            slab = jnp.concatenate(
                [pad_gates(p["w_ih"][idx]), pad_gates(p["w_hh"][idx])], axis=0)
            slab = jnp.pad(slab, ((0, k_max - slab.shape[0]), (0, 0)))
            w_slabs.append(slab)
            b_slabs.append(pad_gates(p["b"][idx]).reshape(1, 4 * HP))
    w_lstm = jnp.stack(w_slabs)
    b_lstm = jnp.stack(b_slabs)

    # Head: split w1 per direction (no lane concat in-kernel), 128-lane cols.
    def pad_cols(w):
        return jnp.pad(w, ((0, 0), (0, _LANE - w.shape[-1])))

    if direction == 2:
        w1a, w1b = p["w1"][:H], p["w1"][H:]
    else:
        w1a, w1b = p["w1"], jnp.zeros_like(p["w1"])
    w_head = jnp.stack([pad_cols(w1a), pad_cols(w1b), pad_cols(p["w2"])])
    b_head = jnp.stack([
        jnp.pad(p["b1"], (0, _LANE - p["b1"].shape[0])).reshape(1, _LANE),
        jnp.pad(p["b2"], (0, _LANE - p["b2"].shape[0])).reshape(1, _LANE)])

    return {"emb": emb, "w_lstm": w_lstm, "b_lstm": b_lstm,
            "w_head": w_head, "b_head": b_head}


# ----------------------------------------------------------------------------
# Forward (jit wrapper) and pure-JAX reference
# ----------------------------------------------------------------------------
@functools.partial(jax.jit,
                   static_argnames=("n_layers", "direction", "output_size"))
def forward(packed, tokens, h0, c0, *, n_layers, direction, output_size):
    """tokens: (B,) int32; h0/c0: (n_layers*direction, B, H)."""
    tok2d = tokens.reshape(-1, 1).astype(jnp.int32)
    out_pad, hcn = fused_forward(
        tok2d, packed["emb"], h0, c0,
        packed["w_lstm"], packed["b_lstm"], packed["w_head"], packed["b_head"],
        n_layers=n_layers, direction=direction)
    H = h0.shape[-1]
    out = out_pad[:, :output_size]
    hn = hcn[..., :H]
    cn = hcn[..., H:]
    return out, (hn, cn)


def forward_ref(p, tokens, h0, c0, *, n_layers, direction):
    HIGH = jax.lax.Precision.HIGHEST
    H = h0.shape[-1]
    x = jnp.take(p["embedding"], tokens, axis=0)
    layer_in = x
    hs, cs = [], []
    for layer in range(n_layers):
        outs = []
        for d in range(direction):
            idx = layer * direction + d
            gates = (jnp.dot(layer_in, p["w_ih"][idx], precision=HIGH)
                     + jnp.dot(h0[idx], p["w_hh"][idx], precision=HIGH)
                     + p["b"][idx])
            i = jax.nn.sigmoid(gates[:, :H])
            f = jax.nn.sigmoid(gates[:, H:2 * H])
            g = jnp.tanh(gates[:, 2 * H:3 * H])
            o = jax.nn.sigmoid(gates[:, 3 * H:])
            c_n = f * c0[idx] + i * g
            h_n = o * jnp.tanh(c_n)
            hs.append(h_n)
            cs.append(c_n)
            outs.append(h_n)
        layer_in = jnp.concatenate(outs, axis=-1) if direction == 2 else outs[0]
    mid = jnp.dot(layer_in, p["w1"], precision=HIGH) + p["b1"]
    out = jnp.dot(mid, p["w2"], precision=HIGH) + p["b2"]
    return out, (jnp.stack(hs), jnp.stack(cs))


# ----------------------------------------------------------------------------
if __name__ == "__main__":
    vocab = 50
    hidden_size = 32            # embedding dim == LSTM input size
    amp = 2
    n_layers = 2
    direction = 2               # bidirectional
    output_size = 16
    batch = 8
    H = hidden_size * amp       # LSTM hidden size = 64

    key = jax.random.PRNGKey(0)
    kp, kt, kh, kc = jax.random.split(key, 4)
    logical = init_params(kp, vocab, hidden_size, H, n_layers, direction,
                          output_size)
    packed = pack_params(logical, vocab=vocab, emb_dim=hidden_size, hidden=H,
                         n_layers=n_layers, direction=direction)

    tokens = jax.random.randint(kt, (batch,), 0, vocab, dtype=jnp.int32)
    # Module's initHidden() gives zeros; use small random state so the
    # recurrent (W_hh / c_prev) paths are actually exercised by the check.
    h0 = jax.random.normal(kh, (n_layers * direction, batch, H), jnp.float32) * 0.1
    c0 = jax.random.normal(kc, (n_layers * direction, batch, H), jnp.float32) * 0.1

    out, (hn, cn) = forward(packed, tokens, h0, c0, n_layers=n_layers,
                            direction=direction, output_size=output_size)
    jax.block_until_ready((out, hn, cn))

    out_r, (hn_r, cn_r) = forward_ref(logical, tokens, h0, c0,
                                      n_layers=n_layers, direction=direction)
    assert out.shape == (batch, output_size)
    assert hn.shape == (n_layers * direction, batch, H)
    assert cn.shape == (n_layers * direction, batch, H)
    assert jnp.allclose(out, out_r, atol=1e-3, rtol=1e-3), \
        float(jnp.max(jnp.abs(out - out_r)))
    assert jnp.allclose(hn, hn_r, atol=1e-3, rtol=1e-3), \
        float(jnp.max(jnp.abs(hn - hn_r)))
    assert jnp.allclose(cn, cn_r, atol=1e-3, rtol=1e-3), \
        float(jnp.max(jnp.abs(cn - cn_r)))

    print("KERNEL_OK")
</pallas_src>

<mosaic_0001>
module attributes {stable_mosaic.version = 11 : i64} {
  func.func @kernel(%arg0: memref<8x1xi32, #tpu.memory_space<vmem>>, %arg1: memref<128x32xf32, #tpu.memory_space<vmem>>, %arg2: memref<4x8x64xf32, #tpu.memory_space<vmem>>, %arg3: memref<4x8x64xf32, #tpu.memory_space<vmem>>, %arg4: memref<4x192x512xf32, #tpu.memory_space<vmem>>, %arg5: memref<4x1x512xf32, #tpu.memory_space<vmem>>, %arg6: memref<3x64x128xf32, #tpu.memory_space<vmem>>, %arg7: memref<2x1x128xf32, #tpu.memory_space<vmem>>, %arg8: memref<8x128xf32, #tpu.memory_space<vmem>>, %arg9: memref<4x8x128xf32, #tpu.memory_space<vmem>>) attributes {dimension_semantics = [], scalar_prefetch = 0 : i64, scratch_operands = 0 : i64, tpu.core_type = #tpu.core_type<tc>} {
    %c0 = arith.constant 0 : index
    %c0_0 = arith.constant 0 : index
    %0 = vector.load %arg0[%c0, %c0_0] : memref<8x1xi32, #tpu.memory_space<vmem>>, vector<8x1xi32>
    %1 = tpu.iota {dimensions = array<i32: 1>} : vector<8x128xi32>
    %2 = vector.broadcast %0 : vector<8x1xi32> to vector<8x128xi32>
    %3 = arith.cmpi eq, %1, %2 : vector<8x128xi32>
    %4 = arith.extui %3 : vector<8x128xi1> to vector<8x128xi32>
    %5 = arith.sitofp %4 : vector<8x128xi32> to vector<8x128xf32>
    %c0_1 = arith.constant 0 : index
    %c0_2 = arith.constant 0 : index
    %6 = vector.load %arg1[%c0_1, %c0_2] : memref<128x32xf32, #tpu.memory_space<vmem>>, vector<128x32xf32>
    %cst = arith.constant dense<0.000000e+00> : vector<8x32xf32>
    %7 = tpu.matmul %5, %6, %cst {dimension_numbers = #tpu.dot_dimension_numbers<[1], [0], [0], [1], [0, 0, 1, 1], [], []>} : vector<8x128xf32>, vector<128x32xf32>, vector<8x32xf32> -> vector<8x32xf32>
    %c0_3 = arith.constant 0 : index
    %c0_4 = arith.constant 0 : index
    %c0_5 = arith.constant 0 : index
    %8 = vector.load %arg2[%c0_3, %c0_4, %c0_5] : memref<4x8x64xf32, #tpu.memory_space<vmem>>, vector<1x8x64xf32>
    %9 = vector.shape_cast %8 : vector<1x8x64xf32> to vector<8x64xf32>
    %c0_6 = arith.constant 0 : index
    %c0_7 = arith.constant 0 : index
    %c0_8 = arith.constant 0 : index
    %10 = vector.load %arg3[%c0_6, %c0_7, %c0_8] : memref<4x8x64xf32, #tpu.memory_space<vmem>>, vector<1x8x64xf32>
    %11 = vector.shape_cast %10 : vector<1x8x64xf32> to vector<8x64xf32>
    %c0_9 = arith.constant 0 : index
    %c0_10 = arith.constant 0 : index
    %c0_11 = arith.constant 0 : index
    %12 = vector.load %arg4[%c0_9, %c0_10, %c0_11] : memref<4x192x512xf32, #tpu.memory_space<vmem>>, vector<1x32x512xf32>
    %13 = vector.shape_cast %12 : vector<1x32x512xf32> to vector<32x512xf32>
    %cst_12 = arith.constant dense<0.000000e+00> : vector<8x512xf32>
    %14 = tpu.matmul %7, %13, %cst_12 {dimension_numbers = #tpu.dot_dimension_numbers<[1], [0], [0], [1], [0, 0, 1, 1], [], []>} : vector<8x32xf32>, vector<32x512xf32>, vector<8x512xf32> -> vector<8x512xf32>
    %c0_13 = arith.constant 0 : index
    %c32 = arith.constant 32 : index
    %c0_14 = arith.constant 0 : index
    %15 = vector.load %arg4[%c0_13, %c32, %c0_14] : memref<4x192x512xf32, #tpu.memory_space<vmem>>, vector<1x64x512xf32>
    %16 = vector.shape_cast %15 : vector<1x64x512xf32> to vector<64x512xf32>
    %cst_15 = arith.constant dense<0.000000e+00> : vector<8x512xf32>
    %17 = tpu.matmul %9, %16, %cst_15 {dimension_numbers = #tpu.dot_dimension_numbers<[1], [0], [0], [1], [0, 0, 1, 1], [], []>} : vector<8x64xf32>, vector<64x512xf32>, vector<8x512xf32> -> vector<8x512xf32>
    %18 = arith.addf %14, %17 : vector<8x512xf32>
    %c0_16 = arith.constant 0 : index
    %c0_17 = arith.constant 0 : index
    %c0_18 = arith.constant 0 : index
    %19 = vector.load %arg5[%c0_16, %c0_17, %c0_18] : memref<4x1x512xf32, #tpu.memory_space<vmem>>, vector<1x1x512xf32>
    %20 = vector.shape_cast %19 : vector<1x1x512xf32> to vector<1x512xf32>
    %21 = vector.broadcast %20 : vector<1x512xf32> to vector<8x512xf32>
    %22 = arith.addf %18, %21 : vector<8x512xf32>
    %23 = vector.extract_strided_slice %22 {offsets = [0, 0], sizes = [8, 384], strides = [1, 1]} : vector<8x512xf32> to vector<8x384xf32>
    %24 = arith.negf %23 : vector<8x384xf32>
    %25 = math.exp %24 : vector<8x384xf32>
    %cst_19 = arith.constant 1.000000e+00 : f32
    %26 = vector.broadcast %cst_19 : f32 to vector<8x384xf32>
    %27 = arith.addf %26, %25 : vector<8x384xf32>
    %28 = arith.divf %26, %27 : vector<8x384xf32>
    %29 = vector.extract_strided_slice %28 {offsets = [0, 0], sizes = [8, 64], strides = [1, 1]} : vector<8x384xf32> to vector<8x64xf32>
    %30 = vector.extract_strided_slice %28 {offsets = [0, 128], sizes = [8, 64], strides = [1, 1]} : vector<8x384xf32> to vector<8x64xf32>
    %31 = vector.extract_strided_slice %28 {offsets = [0, 256], sizes = [8, 64], strides = [1, 1]} : vector<8x384xf32> to vector<8x64xf32>
    %32 = vector.extract_strided_slice %22 {offsets = [0, 384], sizes = [8, 64], strides = [1, 1]} : vector<8x512xf32> to vector<8x64xf32>
    %33 = math.tanh %32 : vector<8x64xf32>
    %34 = arith.mulf %30, %11 : vector<8x64xf32>
    %35 = arith.mulf %29, %33 : vector<8x64xf32>
    %36 = arith.addf %34, %35 : vector<8x64xf32>
    %37 = math.tanh %36 : vector<8x64xf32>
    %38 = arith.mulf %31, %37 : vector<8x64xf32>
    %39 = tpu.concatenate %38, %36 in 1 : vector<8x64xf32>, vector<8x64xf32> -> vector<8x128xf32>
    %c0_20 = arith.constant 0 : index
    %c0_21 = arith.constant 0 : index
    %c0_22 = arith.constant 0 : index
    %40 = vector.load %arg9[%c0_20, %c0_21, %c0_22] : memref<4x8x128xf32, #tpu.memory_space<vmem>>, vector<1x8x128xf32>
    %41 = vector.shape_cast %40 : vector<1x8x128xf32> to vector<8x128xf32>
    %42 = vector.shape_cast %39 : vector<8x128xf32> to vector<1x8x128xf32>
    tpu.vector_store %arg9[%c0_20, %c0_21, %c0_22], %42 {strides = array<i32>} : memref<4x8x128xf32, #tpu.memory_space<vmem>>, vector<1x8x128xf32>,
    %c1 = arith.constant 1 : index
    %c0_23 = arith.constant 0 : index
    %c0_24 = arith.constant 0 : index
    %43 = vector.load %arg2[%c1, %c0_23, %c0_24] : memref<4x8x64xf32, #tpu.memory_space<vmem>>, vector<1x8x64xf32>
    %44 = vector.shape_cast %43 : vector<1x8x64xf32> to vector<8x64xf32>
    %c1_25 = arith.constant 1 : index
    %c0_26 = arith.constant 0 : index
    %c0_27 = arith.constant 0 : index
    %45 = vector.load %arg3[%c1_25, %c0_26, %c0_27] : memref<4x8x64xf32, #tpu.memory_space<vmem>>, vector<1x8x64xf32>
    %46 = vector.shape_cast %45 : vector<1x8x64xf32> to vector<8x64xf32>
    %c1_28 = arith.constant 1 : index
    %c0_29 = arith.constant 0 : index
    %c0_30 = arith.constant 0 : index
    %47 = vector.load %arg4[%c1_28, %c0_29, %c0_30] : memref<4x192x512xf32, #tpu.memory_space<vmem>>, vector<1x32x512xf32>
    %48 = vector.shape_cast %47 : vector<1x32x512xf32> to vector<32x512xf32>
    %cst_31 = arith.constant dense<0.000000e+00> : vector<8x512xf32>
    %49 = tpu.matmul %7, %48, %cst_31 {dimension_numbers = #tpu.dot_dimension_numbers<[1], [0], [0], [1], [0, 0, 1, 1], [], []>} : vector<8x32xf32>, vector<32x512xf32>, vector<8x512xf32> -> vector<8x512xf32>
    %c1_32 = arith.constant 1 : index
    %c32_33 = arith.constant 32 : index
    %c0_34 = arith.constant 0 : index
    %50 = vector.load %arg4[%c1_32, %c32_33, %c0_34] : memref<4x192x512xf32, #tpu.memory_space<vmem>>, vector<1x64x512xf32>
    %51 = vector.shape_cast %50 : vector<1x64x512xf32> to vector<64x512xf32>
    %cst_35 = arith.constant dense<0.000000e+00> : vector<8x512xf32>
    %52 = tpu.matmul %44, %51, %cst_35 {dimension_numbers = #tpu.dot_dimension_numbers<[1], [0], [0], [1], [0, 0, 1, 1], [], []>} : vector<8x64xf32>, vector<64x512xf32>, vector<8x512xf32> -> vector<8x512xf32>
    %53 = arith.addf %49, %52 : vector<8x512xf32>
    %c1_36 = arith.constant 1 : index
    %c0_37 = arith.constant 0 : index
    %c0_38 = arith.constant 0 : index
    %54 = vector.load %arg5[%c1_36, %c0_37, %c0_38] : memref<4x1x512xf32, #tpu.memory_space<vmem>>, vector<1x1x512xf32>
    %55 = vector.shape_cast %54 : vector<1x1x512xf32> to vector<1x512xf32>
    %56 = vector.broadcast %55 : vector<1x512xf32> to vector<8x512xf32>
    %57 = arith.addf %53, %56 : vector<8x512xf32>
    %58 = vector.extract_strided_slice %57 {offsets = [0, 0], sizes = [8, 384], strides = [1, 1]} : vector<8x512xf32> to vector<8x384xf32>
    %59 = arith.negf %58 : vector<8x384xf32>
    %60 = math.exp %59 : vector<8x384xf32>
    %cst_39 = arith.constant 1.000000e+00 : f32
    %61 = vector.broadcast %cst_39 : f32 to vector<8x384xf32>
    %62 = arith.addf %61, %60 : vector<8x384xf32>
    %63 = arith.divf %61, %62 : vector<8x384xf32>
    %64 = vector.extract_strided_slice %63 {offsets = [0, 0], sizes = [8, 64], strides = [1, 1]} : vector<8x384xf32> to vector<8x64xf32>
    %65 = vector.extract_strided_slice %63 {offsets = [0, 128], sizes = [8, 64], strides = [1, 1]} : vector<8x384xf32> to vector<8x64xf32>
    %66 = vector.extract_strided_slice %63 {offsets = [0, 256], sizes = [8, 64], strides = [1, 1]} : vector<8x384xf32> to vector<8x64xf32>
    %67 = vector.extract_strided_slice %57 {offsets = [0, 384], sizes = [8, 64], strides = [1, 1]} : vector<8x512xf32> to vector<8x64xf32>
    %68 = math.tanh %67 : vector<8x64xf32>
    %69 = arith.mulf %65, %46 : vector<8x64xf32>
    %70 = arith.mulf %64, %68 : vector<8x64xf32>
    %71 = arith.addf %69, %70 : vector<8x64xf32>
    %72 = math.tanh %71 : vector<8x64xf32>
    %73 = arith.mulf %66, %72 : vector<8x64xf32>
    %74 = tpu.concatenate %73, %71 in 1 : vector<8x64xf32>, vector<8x64xf32> -> vector<8x128xf32>
    %c1_40 = arith.constant 1 : index
    %c0_41 = arith.constant 0 : index
    %c0_42 = arith.constant 0 : index
    %75 = vector.load %arg9[%c1_40, %c0_41, %c0_42] : memref<4x8x128xf32, #tpu.memory_space<vmem>>, vector<1x8x128xf32>
    %76 = vector.shape_cast %75 : vector<1x8x128xf32> to vector<8x128xf32>
    %77 = vector.shape_cast %74 : vector<8x128xf32> to vector<1x8x128xf32>
    tpu.vector_store %arg9[%c1_40, %c0_41, %c0_42], %77 {strides = array<i32>} : memref<4x8x128xf32, #tpu.memory_space<vmem>>, vector<1x8x128xf32>,
    %c2 = arith.constant 2 : index
    %c0_43 = arith.constant 0 : index
    %c0_44 = arith.constant 0 : index
    %78 = vector.load %arg2[%c2, %c0_43, %c0_44] : memref<4x8x64xf32, #tpu.memory_space<vmem>>, vector<1x8x64xf32>
    %79 = vector.shape_cast %78 : vector<1x8x64xf32> to vector<8x64xf32>
    %c2_45 = arith.constant 2 : index
    %c0_46 = arith.constant 0 : index
    %c0_47 = arith.constant 0 : index
    %80 = vector.load %arg3[%c2_45, %c0_46, %c0_47] : memref<4x8x64xf32, #tpu.memory_space<vmem>>, vector<1x8x64xf32>
    %81 = vector.shape_cast %80 : vector<1x8x64xf32> to vector<8x64xf32>
    %c2_48 = arith.constant 2 : index
    %c0_49 = arith.constant 0 : index
    %c0_50 = arith.constant 0 : index
    %82 = vector.load %arg4[%c2_48, %c0_49, %c0_50] : memref<4x192x512xf32, #tpu.memory_space<vmem>>, vector<1x64x512xf32>
    %83 = vector.shape_cast %82 : vector<1x64x512xf32> to vector<64x512xf32>
    %cst_51 = arith.constant dense<0.000000e+00> : vector<8x512xf32>
    %84 = tpu.matmul %38, %83, %cst_51 {dimension_numbers = #tpu.dot_dimension_numbers<[1], [0], [0], [1], [0, 0, 1, 1], [], []>} : vector<8x64xf32>, vector<64x512xf32>, vector<8x512xf32> -> vector<8x512xf32>
    %c2_52 = arith.constant 2 : index
    %c128 = arith.constant 128 : index
    %c0_53 = arith.constant 0 : index
    %85 = vector.load %arg4[%c2_52, %c128, %c0_53] : memref<4x192x512xf32, #tpu.memory_space<vmem>>, vector<1x64x512xf32>
    %86 = vector.shape_cast %85 : vector<1x64x512xf32> to vector<64x512xf32>
    %cst_54 = arith.constant dense<0.000000e+00> : vector<8x512xf32>
    %87 = tpu.matmul %79, %86, %cst_54 {dimension_numbers = #tpu.dot_dimension_numbers<[1], [0], [0], [1], [0, 0, 1, 1], [], []>} : vector<8x64xf32>, vector<64x512xf32>, vector<8x512xf32> -> vector<8x512xf32>
    %88 = arith.addf %84, %87 : vector<8x512xf32>
    %c2_55 = arith.constant 2 : index
    %c64 = arith.constant 64 : index
    %c0_56 = arith.constant 0 : index
    %89 = vector.load %arg4[%c2_55, %c64, %c0_56] : memref<4x192x512xf32, #tpu.memory_space<vmem>>, vector<1x64x512xf32>
    %90 = vector.shape_cast %89 : vector<1x64x512xf32> to vector<64x512xf32>
    %cst_57 = arith.constant dense<0.000000e+00> : vector<8x512xf32>
    %91 = tpu.matmul %73, %90, %cst_57 {dimension_numbers = #tpu.dot_dimension_numbers<[1], [0], [0], [1], [0, 0, 1, 1], [], []>} : vector<8x64xf32>, vector<64x512xf32>, vector<8x512xf32> -> vector<8x512xf32>
    %92 = arith.addf %88, %91 : vector<8x512xf32>
    %c2_58 = arith.constant 2 : index
    %c0_59 = arith.constant 0 : index
    %c0_60 = arith.constant 0 : index
    %93 = vector.load %arg5[%c2_58, %c0_59, %c0_60] : memref<4x1x512xf32, #tpu.memory_space<vmem>>, vector<1x1x512xf32>
    %94 = vector.shape_cast %93 : vector<1x1x512xf32> to vector<1x512xf32>
    %95 = vector.broadcast %94 : vector<1x512xf32> to vector<8x512xf32>
    %96 = arith.addf %92, %95 : vector<8x512xf32>
    %97 = vector.extract_strided_slice %96 {offsets = [0, 0], sizes = [8, 384], strides = [1, 1]} : vector<8x512xf32> to vector<8x384xf32>
    %98 = arith.negf %97 : vector<8x384xf32>
    %99 = math.exp %98 : vector<8x384xf32>
    %cst_61 = arith.constant 1.000000e+00 : f32
    %100 = vector.broadcast %cst_61 : f32 to vector<8x384xf32>
    %101 = arith.addf %100, %99 : vector<8x384xf32>
    %102 = arith.divf %100, %101 : vector<8x384xf32>
    %103 = vector.extract_strided_slice %102 {offsets = [0, 0], sizes = [8, 64], strides = [1, 1]} : vector<8x384xf32> to vector<8x64xf32>
    %104 = vector.extract_strided_slice %102 {offsets = [0, 128], sizes = [8, 64], strides = [1, 1]} : vector<8x384xf32> to vector<8x64xf32>
    %105 = vector.extract_strided_slice %102 {offsets = [0, 256], sizes = [8, 64], strides = [1, 1]} : vector<8x384xf32> to vector<8x64xf32>
    %106 = vector.extract_strided_slice %96 {offsets = [0, 384], sizes = [8, 64], strides = [1, 1]} : vector<8x512xf32> to vector<8x64xf32>
    %107 = math.tanh %106 : vector<8x64xf32>
    %108 = arith.mulf %104, %81 : vector<8x64xf32>
    %109 = arith.mulf %103, %107 : vector<8x64xf32>
    %110 = arith.addf %108, %109 : vector<8x64xf32>
    %111 = math.tanh %110 : vector<8x64xf32>
    %112 = arith.mulf %105, %111 : vector<8x64xf32>
    %113 = tpu.concatenate %112, %110 in 1 : vector<8x64xf32>, vector<8x64xf32> -> vector<8x128xf32>
    %c2_62 = arith.constant 2 : index
    %c0_63 = arith.constant 0 : index
    %c0_64 = arith.constant 0 : index
    %114 = vector.load %arg9[%c2_62, %c0_63, %c0_64] : memref<4x8x128xf32, #tpu.memory_space<vmem>>, vector<1x8x128xf32>
    %115 = vector.shape_cast %114 : vector<1x8x128xf32> to vector<8x128xf32>
    %116 = vector.shape_cast %113 : vector<8x128xf32> to vector<1x8x128xf32>
    tpu.vector_store %arg9[%c2_62, %c0_63, %c0_64], %116 {strides = array<i32>} : memref<4x8x128xf32, #tpu.memory_space<vmem>>, vector<1x8x128xf32>,
    %c3 = arith.constant 3 : index
    %c0_65 = arith.constant 0 : index
    %c0_66 = arith.constant 0 : index
    %117 = vector.load %arg2[%c3, %c0_65, %c0_66] : memref<4x8x64xf32, #tpu.memory_space<vmem>>, vector<1x8x64xf32>
    %118 = vector.shape_cast %117 : vector<1x8x64xf32> to vector<8x64xf32>
    %c3_67 = arith.constant 3 : index
    %c0_68 = arith.constant 0 : index
    %c0_69 = arith.constant 0 : index
    %119 = vector.load %arg3[%c3_67, %c0_68, %c0_69] : memref<4x8x64xf32, #tpu.memory_space<vmem>>, vector<1x8x64xf32>
    %120 = vector.shape_cast %119 : vector<1x8x64xf32> to vector<8x64xf32>
    %c3_70 = arith.constant 3 : index
    %c0_71 = arith.constant 0 : index
    %c0_72 = arith.constant 0 : index
    %121 = vector.load %arg4[%c3_70, %c0_71, %c0_72] : memref<4x192x512xf32, #tpu.memory_space<vmem>>, vector<1x64x512xf32>
    %122 = vector.shape_cast %121 : vector<1x64x512xf32> to vector<64x512xf32>
    %cst_73 = arith.constant dense<0.000000e+00> : vector<8x512xf32>
    %123 = tpu.matmul %38, %122, %cst_73 {dimension_numbers = #tpu.dot_dimension_numbers<[1], [0], [0], [1], [0, 0, 1, 1], [], []>} : vector<8x64xf32>, vector<64x512xf32>, vector<8x512xf32> -> vector<8x512xf32>
    %c3_74 = arith.constant 3 : index
    %c128_75 = arith.constant 128 : index
    %c0_76 = arith.constant 0 : index
    %124 = vector.load %arg4[%c3_74, %c128_75, %c0_76] : memref<4x192x512xf32, #tpu.memory_space<vmem>>, vector<1x64x512xf32>
    %125 = vector.shape_cast %124 : vector<1x64x512xf32> to vector<64x512xf32>
    %cst_77 = arith.constant dense<0.000000e+00> : vector<8x512xf32>
    %126 = tpu.matmul %118, %125, %cst_77 {dimension_numbers = #tpu.dot_dimension_numbers<[1], [0], [0], [1], [0, 0, 1, 1], [], []>} : vector<8x64xf32>, vector<64x512xf32>, vector<8x512xf32> -> vector<8x512xf32>
    %127 = arith.addf %123, %126 : vector<8x512xf32>
    %c3_78 = arith.constant 3 : index
    %c64_79 = arith.constant 64 : index
    %c0_80 = arith.constant 0 : index
    %128 = vector.load %arg4[%c3_78, %c64_79, %c0_80] : memref<4x192x512xf32, #tpu.memory_space<vmem>>, vector<1x64x512xf32>
    %129 = vector.shape_cast %128 : vector<1x64x512xf32> to vector<64x512xf32>
    %cst_81 = arith.constant dense<0.000000e+00> : vector<8x512xf32>
    %130 = tpu.matmul %73, %129, %cst_81 {dimension_numbers = #tpu.dot_dimension_numbers<[1], [0], [0], [1], [0, 0, 1, 1], [], []>} : vector<8x64xf32>, vector<64x512xf32>, vector<8x512xf32> -> vector<8x512xf32>
    %131 = arith.addf %127, %130 : vector<8x512xf32>
    %c3_82 = arith.constant 3 : index
    %c0_83 = arith.constant 0 : index
    %c0_84 = arith.constant 0 : index
    %132 = vector.load %arg5[%c3_82, %c0_83, %c0_84] : memref<4x1x512xf32, #tpu.memory_space<vmem>>, vector<1x1x512xf32>
    %133 = vector.shape_cast %132 : vector<1x1x512xf32> to vector<1x512xf32>
    %134 = vector.broadcast %133 : vector<1x512xf32> to vector<8x512xf32>
    %135 = arith.addf %131, %134 : vector<8x512xf32>
    %136 = vector.extract_strided_slice %135 {offsets = [0, 0], sizes = [8, 384], strides = [1, 1]} : vector<8x512xf32> to vector<8x384xf32>
    %137 = arith.negf %136 : vector<8x384xf32>
    %138 = math.exp %137 : vector<8x384xf32>
    %cst_85 = arith.constant 1.000000e+00 : f32
    %139 = vector.broadcast %cst_85 : f32 to vector<8x384xf32>
    %140 = arith.addf %139, %138 : vector<8x384xf32>
    %141 = arith.divf %139, %140 : vector<8x384xf32>
    %142 = vector.extract_strided_slice %141 {offsets = [0, 0], sizes = [8, 64], strides = [1, 1]} : vector<8x384xf32> to vector<8x64xf32>
    %143 = vector.extract_strided_slice %141 {offsets = [0, 128], sizes = [8, 64], strides = [1, 1]} : vector<8x384xf32> to vector<8x64xf32>
    %144 = vector.extract_strided_slice %141 {offsets = [0, 256], sizes = [8, 64], strides = [1, 1]} : vector<8x384xf32> to vector<8x64xf32>
    %145 = vector.extract_strided_slice %135 {offsets = [0, 384], sizes = [8, 64], strides = [1, 1]} : vector<8x512xf32> to vector<8x64xf32>
    %146 = math.tanh %145 : vector<8x64xf32>
    %147 = arith.mulf %143, %120 : vector<8x64xf32>
    %148 = arith.mulf %142, %146 : vector<8x64xf32>
    %149 = arith.addf %147, %148 : vector<8x64xf32>
    %150 = math.tanh %149 : vector<8x64xf32>
    %151 = arith.mulf %144, %150 : vector<8x64xf32>
    %152 = tpu.concatenate %151, %149 in 1 : vector<8x64xf32>, vector<8x64xf32> -> vector<8x128xf32>
    %c3_86 = arith.constant 3 : index
    %c0_87 = arith.constant 0 : index
    %c0_88 = arith.constant 0 : index
    %153 = vector.load %arg9[%c3_86, %c0_87, %c0_88] : memref<4x8x128xf32, #tpu.memory_space<vmem>>, vector<1x8x128xf32>
    %154 = vector.shape_cast %153 : vector<1x8x128xf32> to vector<8x128xf32>
    %155 = vector.shape_cast %152 : vector<8x128xf32> to vector<1x8x128xf32>
    tpu.vector_store %arg9[%c3_86, %c0_87, %c0_88], %155 {strides = array<i32>} : memref<4x8x128xf32, #tpu.memory_space<vmem>>, vector<1x8x128xf32>,
    %c0_89 = arith.constant 0 : index
    %c0_90 = arith.constant 0 : index
    %c0_91 = arith.constant 0 : index
    %156 = vector.load %arg6[%c0_89, %c0_90, %c0_91] : memref<3x64x128xf32, #tpu.memory_space<vmem>>, vector<1x64x128xf32>
    %157 = vector.shape_cast %156 : vector<1x64x128xf32> to vector<64x128xf32>
    %cst_92 = arith.constant dense<0.000000e+00> : vector<8x128xf32>
    %158 = tpu.matmul %112, %157, %cst_92 {dimension_numbers = #tpu.dot_dimension_numbers<[1], [0], [0], [1], [0, 0, 1, 1], [], []>} : vector<8x64xf32>, vector<64x128xf32>, vector<8x128xf32> -> vector<8x128xf32>
    %c1_93 = arith.constant 1 : index
    %c0_94 = arith.constant 0 : index
    %c0_95 = arith.constant 0 : index
    %159 = vector.load %arg6[%c1_93, %c0_94, %c0_95] : memref<3x64x128xf32, #tpu.memory_space<vmem>>, vector<1x64x128xf32>
    %160 = vector.shape_cast %159 : vector<1x64x128xf32> to vector<64x128xf32>
    %cst_96 = arith.constant dense<0.000000e+00> : vector<8x128xf32>
    %161 = tpu.matmul %151, %160, %cst_96 {dimension_numbers = #tpu.dot_dimension_numbers<[1], [0], [0], [1], [0, 0, 1, 1], [], []>} : vector<8x64xf32>, vector<64x128xf32>, vector<8x128xf32> -> vector<8x128xf32>
    %162 = arith.addf %158, %161 : vector<8x128xf32>
    %c0_97 = arith.constant 0 : index
    %c0_98 = arith.constant 0 : index
    %c0_99 = arith.constant 0 : index
    %163 = vector.load %arg7[%c0_97, %c0_98, %c0_99] : memref<2x1x128xf32, #tpu.memory_space<vmem>>, vector<1x1x128xf32>
    %164 = vector.shape_cast %163 : vector<1x1x128xf32> to vector<1x128xf32>
    %165 = vector.broadcast %164 : vector<1x128xf32> to vector<8x128xf32>
    %166 = arith.addf %162, %165 : vector<8x128xf32>
    %167 = vector.extract_strided_slice %166 {offsets = [0, 0], sizes = [8, 64], strides = [1, 1]} : vector<8x128xf32> to vector<8x64xf32>
    %c2_100 = arith.constant 2 : index
    %c0_101 = arith.constant 0 : index
    %c0_102 = arith.constant 0 : index
    %168 = vector.load %arg6[%c2_100, %c0_101, %c0_102] : memref<3x64x128xf32, #tpu.memory_space<vmem>>, vector<1x64x128xf32>
    %169 = vector.shape_cast %168 : vector<1x64x128xf32> to vector<64x128xf32>
    %cst_103 = arith.constant dense<0.000000e+00> : vector<8x128xf32>
    %170 = tpu.matmul %167, %169, %cst_103 {dimension_numbers = #tpu.dot_dimension_numbers<[1], [0], [0], [1], [0, 0, 1, 1], [], []>} : vector<8x64xf32>, vector<64x128xf32>, vector<8x128xf32> -> vector<8x128xf32>
    %c1_104 = arith.constant 1 : index
    %c0_105 = arith.constant 0 : index
    %c0_106 = arith.constant 0 : index
    %171 = vector.load %arg7[%c1_104, %c0_105, %c0_106] : memref<2x1x128xf32, #tpu.memory_space<vmem>>, vector<1x1x128xf32>
    %172 = vector.shape_cast %171 : vector<1x1x128xf32> to vector<1x128xf32>
    %173 = vector.broadcast %172 : vector<1x128xf32> to vector<8x128xf32>
    %174 = arith.addf %170, %173 : vector<8x128xf32>
    %c0_107 = arith.constant 0 : index
    %c0_108 = arith.constant 0 : index
    %175 = vector.load %arg8[%c0_107, %c0_108] : memref<8x128xf32, #tpu.memory_space<vmem>>, vector<8x128xf32>
    tpu.vector_store %arg8[%c0_107, %c0_108], %174 {strides = array<i32>} : memref<8x128xf32, #tpu.memory_space<vmem>>, vector<8x128xf32>,
    return
  }
}

</mosaic_0001>

<bundles_post_ra>
// kernel: forward.1
= control target key start
LH: loop header
LB: loop body
LE: loop exit
PB: predicated region body
PF: predicated region fallthrough
CT: control target
= control target key end

     0   :  { %15 = vsyncpa [#allocation3], 0  ;;  %s3660_s0 = inlined_call_operand.vmem [shape: s32[8,1], index: 0, kind: input, shape index: {}]   ;;  %s3661_s1 = inlined_call_operand.vmem [shape: f32[128,32], index: 1, kind: input, shape index: {}]   ;;  %s3662_s2 = inlined_call_operand.hbm [shape: f32[4,8,64], index: 2, kind: input, shape index: {}]   ;;  %s3663_s3 = inlined_call_operand.hbm [shape: f32[4,8,64], index: 3, kind: input, shape index: {}]   ;;  %s3664_s4 = inlined_call_operand.hbm [shape: f32[4,192,512], index: 4, kind: input, shape index: {}]   ;;  %s3665_s5 = inlined_call_operand.hbm [shape: f32[4,1,512], index: 5, kind: input, shape index: {}]   ;;  %s3666_s6 = inlined_call_operand.hbm [shape: f32[3,64,128], index: 6, kind: input, shape index: {}]   ;;  %s3667_s7 = inlined_call_operand.hbm [shape: f32[2,1,128], index: 7, kind: input, shape index: {}]   ;;  %s3668_s8 = inlined_call_operand.hbm [shape: f32[8,128], index: 8, kind: output, shape index: {0}]   ;;  %s3669_s9 = inlined_call_operand.vmem [shape: f32[4,8,128], index: 9, kind: output, shape index: {1}]  }
   0x1   :  { %16 = vsyncpa [#allocation6], 0 }
   0x2   :  { %17 = vsyncpa [#allocation9], 0 }
   0x3   :  { %18 = vsyncpa [#allocation12], 0 }
   0x4   :  { %19 = vsyncpa [#allocation4], 0  ;;  %s3278_s30 = smov [#allocation5]   ;;  %s3279_s11 = smov [#allocation8]  }
   0x5   :  { %s41_s10 = sshll.u32 %s3278_s30, 4  ;;  %s65_s12 = sshll.u32 %s3279_s11, 4  ;;  %s42_s10 = int_to_ptr.vmem [resolvable:$true] %s41_s10  ;;  %s3348_s12 = int_to_ptr.vmem [resolvable:$true] %s65_s12 }
   0x6   :  { %s3114_s15 = scalar_lea.hbm %s3663_s3, 512 }
   0x7   :  { %p3115_p0 = scmp.ne.s32.totalorder %s3663_s3, %s3114_s15  ;;  %p3118_p1 = scmp.lt.u32.totalorder %s3114_s15, %s3663_s3 }
   0x9   :  { %p3120_p2 = pnand %p3118_p1, %p3115_p0 }
   0xb   :  { %3123 = shalt.err (!%p3120_p2)
}
   0xc   :  { %s3124_s20 = scalar_lea.vmem %s42_s10, 512  ;;  %p3129_p4 = scmp.lt.s32.totalorder %s42_s10, %s42_s10 }
   0xd   :  { %p3125_p3 = scmp.ne.s32.totalorder %s42_s10, %s3124_s20  ;;  %p3130_p5 = scmp.lt.s32.totalorder %s3124_s20, %s3124_s20 }
   0xf   :  { %p3131_p6 = por %p3130_p5, %p3129_p4 }
  0x11   :  { %p3132_p7 = pnand %p3131_p6, %p3125_p3 }
  0x13   :  { %3135 = shalt.err (!%p3132_p7)
}
  0x14   :  { %s3280_s21 = smov 128   ;;  %s3281_s22 = smov 8  }
  0x15   :  { %47 = dma.hbm_to_vmem [thread:$0]  %s3663_s3, 512, %s42_s10, [#allocation6], %s3280_s21, %s3280_s21, %s3281_s22  }
  0x16   :  { %s3136_s27 = scalar_lea.hbm %s3665_s5, 256 }
  0x17   :  { %p3137_p8 = scmp.ne.s32.totalorder %s3665_s5, %s3136_s27  ;;  %p3140_p9 = scmp.lt.u32.totalorder %s3136_s27, %s3665_s5 }
  0x19   :  { %p3142_p10 = pnand %p3140_p9, %p3137_p8 }
  0x1b   :  { %3145 = shalt.err (!%p3142_p10)
}
  0x1c   :  { %s3146_s13 = scalar_lea.vmem %s3348_s12, 256  ;;  %p3151_p12 = scmp.lt.s32.totalorder %s3348_s12, %s3348_s12 }
  0x1d   :  { %p3147_p11 = scmp.ne.s32.totalorder %s3348_s12, %s3146_s13  ;;  %p3152_p13 = scmp.lt.s32.totalorder %s3146_s13, %s3146_s13 }
  0x1f   :  { %p3153_p0 = por %p3152_p13, %p3151_p12 }
  0x21   :  { %p3154_p1 = pnand %p3153_p0, %p3147_p11 }
  0x23   :  { %3157 = shalt.err (!%p3154_p1)
}
  0x24   :  { %s3282_s3 = smov 64   ;;  %s3283_s10 = smov 4  }
  0x25   :  { %71 = dma.hbm_to_vmem [thread:$0]  %s3665_s5, 256, %s3348_s12, [#allocation9], %s3282_s3, %s3282_s3, %s3283_s10  }
  0x26   :  { %s3284_s16 = smov [#allocation2]   ;;  %s3285_s18 = smov [#allocation7]  }
  0x27   :  { %s29_s17 = sshll.u32 %s3284_s16, 4  ;;  %s53_s19 = sshll.u32 %s3285_s18, 4  ;;  %s30_s17 = int_to_ptr.vmem [resolvable:$true] %s29_s17  ;;  %s3384_s19 = int_to_ptr.vmem [resolvable:$true] %s53_s19 }
  0x28   :  { %s3158_s24 = scalar_lea.hbm %s3662_s2, 512 }
  0x29   :  { %p3159_p2 = scmp.ne.s32.totalorder %s3662_s2, %s3158_s24  ;;  %p3162_p3 = scmp.lt.u32.totalorder %s3158_s24, %s3662_s2 }
  0x2b   :  { %p3164_p4 = pnand %p3162_p3, %p3159_p2 }
  0x2d   :  { %3167 = shalt.err (!%p3164_p4)
}
  0x2e   :  { %s3168_s5 = scalar_lea.vmem %s30_s17, 512  ;;  %p3173_p6 = scmp.lt.s32.totalorder %s30_s17, %s30_s17 }
  0x2f   :  { %p3169_p5 = scmp.ne.s32.totalorder %s30_s17, %s3168_s5  ;;  %p3174_p7 = scmp.lt.s32.totalorder %s3168_s5, %s3168_s5 }
  0x31   :  { %p3175_p8 = por %p3174_p7, %p3173_p6 }
  0x33   :  { %p3176_p9 = pnand %p3175_p8, %p3169_p5 }
  0x35   :  { %3179 = shalt.err (!%p3176_p9)
}
  0x36   :  { %35 = dma.hbm_to_vmem [thread:$0]  %s3662_s2, 512, %s30_s17, [#allocation3], %s3280_s21, %s3280_s21, %s3281_s22  }
  0x37   :  { %s3180_s13 = scalar_lea.hbm %s3664_s4, 49152 }
  0x38   :  { %p3181_p10 = scmp.ne.s32.totalorder %s3664_s4, %s3180_s13  ;;  %p3184_p11 = scmp.lt.u32.totalorder %s3180_s13, %s3664_s4 }
  0x3a   :  { %p3186_p12 = pnand %p3184_p11, %p3181_p10 }
  0x3c   :  { %3189 = shalt.err (!%p3186_p12)
}
  0x3d   :  { %s3190_s18 = scalar_lea.vmem %s3384_s19, 49152  ;;  %p3195_p0 = scmp.lt.s32.totalorder %s3384_s19, %s3384_s19 }
  0x3e   :  { %p3191_p13 = scmp.ne.s32.totalorder %s3384_s19, %s3190_s18  ;;  %p3196_p1 = scmp.lt.s32.totalorder %s3190_s18, %s3190_s18 }
  0x40   :  { %p3197_p2 = por %p3196_p1, %p3195_p0 }
  0x42   :  { %p3198_p3 = pnand %p3197_p2, %p3191_p13 }
  0x44   :  { %3201 = shalt.err (!%p3198_p3)
}
  0x45   :  { %s3286_s2 = smov 512   ;;  %s3287_s17 = smov 32  }
  0x46   :  { %59 = dma.hbm_to_vmem [thread:$0]  %s3664_s4, 49152, %s3384_s19, [#allocation6], %s3286_s2, %s3286_s2, %s3287_s17  }
  0x47   :  { %s3288_s24 = smov [#allocation10]   ;;  %s3289_s26 = smov [#allocation11]  }
  0x48   :  { %s77_s25 = sshll.u32 %s3288_s24, 4  ;;  %s89_s27 = sshll.u32 %s3289_s26, 4  ;;  %s78_s25 = int_to_ptr.vmem [resolvable:$true] %s77_s25  ;;  %s3418_s27 = int_to_ptr.vmem [resolvable:$true] %s89_s27 }
  0x49   :  { %s3202_s12 = scalar_lea.hbm %s3666_s6, 3072 }
  0x4a   :  { %p3203_p4 = scmp.ne.s32.totalorder %s3666_s6, %s3202_s12  ;;  %p3206_p5 = scmp.lt.u32.totalorder %s3202_s12, %s3666_s6 }
  0x4c   :  { %p3208_p6 = pnand %p3206_p5, %p3203_p4 }
  0x4e   :  { %3211 = shalt.err (!%p3208_p6)
}
  0x4f   :  { %s3212_s4 = scalar_lea.vmem %s78_s25, 3072  ;;  %p3217_p8 = scmp.lt.s32.totalorder %s78_s25, %s78_s25 }
  0x50   :  { %p3213_p7 = scmp.ne.s32.totalorder %s78_s25, %s3212_s4  ;;  %p3218_p9 = scmp.lt.s32.totalorder %s3212_s4, %s3212_s4 }
  0x52   :  { %p3219_p10 = por %p3218_p9, %p3217_p8 }
  0x54   :  { %p3220_p11 = pnand %p3219_p10, %p3213_p7 }
  0x56   :  { %3223 = shalt.err (!%p3220_p11)
}
  0x57   :  { %83 = dma.hbm_to_vmem [thread:$0]  %s3666_s6, 3072, %s78_s25, [#allocation9], %s3280_s21, %s3280_s21, %s3281_s22  }
  0x58   :  { %s3224_s16 = scalar_lea.hbm %s3667_s7, 32 }
  0x59   :  { %p3225_p12 = scmp.ne.s32.totalorder %s3667_s7, %s3224_s16  ;;  %p3228_p13 = scmp.lt.u32.totalorder %s3224_s16, %s3667_s7 }
  0x5b   :  { %p3230_p0 = pnand %p3228_p13, %p3225_p12 }
  0x5d   :  { %3233 = shalt.err (!%p3230_p0)
}
  0x5e   :  { %s3234_s23 = scalar_lea.vmem %s3418_s27, 32  ;;  %p3239_p2 = scmp.lt.s32.totalorder %s3418_s27, %s3418_s27 }
  0x5f   :  { %p3235_p1 = scmp.ne.s32.totalorder %s3418_s27, %s3234_s23  ;;  %p3240_p3 = scmp.lt.s32.totalorder %s3234_s23, %s3234_s23 }
  0x61   :  { %p3241_p4 = por %p3240_p3, %p3239_p2 }
  0x63   :  { %p3242_p5 = pnand %p3241_p4, %p3235_p1 }
  0x65   :  { %3245 = shalt.err (!%p3242_p5)
}
  0x66   :  { %s3290_s6 = smov 16   ;;  %s3291_s21 = smov 1  }
  0x67   :  { %95 = dma.hbm_to_vmem [thread:$0]  %s3667_s7, 32, %s3418_s27, [#allocation12], %s3290_s6, %s3290_s6, %s3291_s21  }
  0x68   :  { %3268 = dma.done.wait [#allocation3], 512  }
  0x69   :  { %3269 = vsyncadd [#allocation3], 4294966784 }
  0x6a   :  { %3270 = dma.done.wait [#allocation6], 49664  }
  0x6b   :  { %3271 = vsyncadd [#allocation6], 4294917632 }
  0x6c   :  { %3272 = dma.done.wait [#allocation9], 3328  }
  0x6d   :  { %3273 = vsyncadd [#allocation9], 4294963968 }
  0x6e   :  { %3274 = dma.done.wait [#allocation12], 32  }
  0x6f   :  { %3275 = vsyncadd [#allocation12], 4294967264  ;;  %v3292_v0 = vmov 0   ;;  %v3293_v1 = vmov 0.0|0.0   ;;  %v114_v2 = vld [vmem:[%s3660_s0] sm:$0xff]  ;;  %v124_v4 = vld [vmem:[%s3661_s1 + $0x8] sm:$0xff] }
  0x70   :  { %3049 = vset.pattern.permute.xlu0 %v3292_v0  ;;  %2657 = vmatprep.subr.bf16.mxu0 %v3293_v1  ;;  %v123_v3 = vld [vmem:[%s3661_s1] sm:$0xff]  ;;  %v125_v6 = vld [vmem:[%s3661_s1 + $0x10] sm:$0xff]  ;;  %v126_v7 = vld [vmem:[%s3661_s1 + $0x18] sm:$0xff]  ;;  %vm3294_vm0 = vmmov 0   ;;  %v3295_v8 = vmov 0.0   ;;  %vm259_vm1 = vcmask 523264  }
  0x71   :  { %118 = vperm.xlu0 %3049, %v114_v2   ;;  %v2658_v5 = vpack.c.bf16 %v124_v4, %v123_v3  ;;  %2597 = vmatprep.mubr.msk.f32.mxu0 %vm3294_vm0, %v3295_v8  ;;  %v2661_v9 = vpack.c.bf16 %v126_v7, %v125_v6  ;;  %v127_v10 = vld [vmem:[%s3661_s1 + $0x20] sm:$0xff]  ;;  %v128_v11 = vld [vmem:[%s3661_s1 + $0x28] sm:$0xff]  ;;  %v129_v17 = vld [vmem:[%s3661_s1 + $0x30] sm:$0xff]  ;;  %vm405_vm3 = vcmask 261120   ;;  %s3297_s19 = smov [#allocation13]  }
  0x72   :  { %327 = vmatprep.mubr.f32.mxu1 %v3295_v8  ;;  %v228_v12 = vld [vmem:[#allocation7 + $0x88] sm:$0xff]  ;;  %v227_v14 = vld [vmem:[#allocation7 + $0x80] sm:$0xff]  ;;  %v2664_v16 = vpack.c.bf16 %v128_v11, %v127_v10  ;;  %v130_v20 = vld [vmem:[%s3661_s1 + $0x38] sm:$0xff]  ;;  %s2463_s10 = sshll.u32 %s3297_s19, 4  ;;  %s2464_s10 = int_to_ptr.vmem [resolvable:$true] %s2463_s10 }
  0x73   :  { %2659 = vmatpush3.bf16.msra.mxu0 %v2658_v5  ;;  %v232_v13 = vld [vmem:[#allocation7 + $0xa8] sm:$0xff]  ;;  %v231_v15 = vld [vmem:[#allocation7 + $0xa0] sm:$0xff]  ;;  %v2667_v27 = vpack.c.bf16 %v130_v20, %v129_v17  ;;  %v133_v39 = vld [vmem:[%s3661_s1 + $0x50] sm:$0xff]  ;;  %s3246_s14 = scalar_lea.vmem %s2464_s10, 128  ;;  %p3251_p7 = scmp.lt.s32.totalorder %s2464_s10, %s2464_s10 }
  0x74   :  { %2660 = vmatprep.subr.bf16.mxu0 %v3293_v1  ;;  %v2681_v18 = vpack.c.bf16 %v232_v13, %v228_v12  ;;  %v2683_v19 = vpack.c.bf16 %v231_v15, %v227_v14  ;;  %v236_v21 = vld [vmem:[#allocation7 + $0xc8] sm:$0xff]  ;;  %v235_v24 = vld [vmem:[#allocation7 + $0xc0] sm:$0xff]  ;;  %v134_v43 = vld [vmem:[%s3661_s1 + $0x58] sm:$0xff]  ;;  %p3247_p6 = scmp.ne.s32.totalorder %s2464_s10, %s3246_s14  ;;  %p3252_p8 = scmp.lt.s32.totalorder %s3246_s14, %s3246_s14 }
  0x75   :  { %v240_v22 = vld [vmem:[#allocation7 + $0xe8] sm:$0xff]  ;;  %v239_v25 = vld [vmem:[#allocation7 + $0xe0] sm:$0xff]  ;;  %v230_v44 = vld [vmem:[#allocation7 + $0x98] sm:$0xff]  ;;  %v2673_v47 = vpack.c.bf16 %v134_v43, %v133_v39  ;;  %v3296_v43 = vmov 1.0  }
  0x76   :  { %2682 = vmatprep.subr.bf16.mxu1 %v2681_v18  ;;  %v2685_v23 = vpack.c.bf16 %v240_v22, %v236_v21  ;;  %v2687_v26 = vpack.c.bf16 %v239_v25, %v235_v24  ;;  %v244_v28 = vld [vmem:[#allocation7 + $0x108] sm:$0xff]  ;;  %v243_v30 = vld [vmem:[#allocation7 + $0x100] sm:$0xff]  ;;  %v234_v45 = vld [vmem:[#allocation7 + $0xb8] sm:$0xff]  ;;  %p3253_p9 = por %p3252_p8, %p3251_p7 }
  0x77   :  { %2662 = vmatpush3.bf16.msra.mxu0 %v2661_v9  ;;  %2684 = vmatpush1.bf16.msra.mxu1 %v2683_v19  ;;  %v248_v29 = vld [vmem:[#allocation7 + $0x128] sm:$0xff]  ;;  %v131_v31 = vld [vmem:[%s3661_s1 + $0x40] sm:$0xff]  ;;  %v2697_v49 = vpack.c.bf16 %v234_v45, %v230_v44  ;;  %v229_v50 = vld [vmem:[#allocation7 + $0x90] sm:$0xff] }
  0x78   :  { %2663 = vmatprep.subr.bf16.mxu0 %v3293_v1  ;;  %2686 = vmatprep.subr.bf16.mxu1 %v2685_v23  ;;  %v132_v32 = vld [vmem:[%s3661_s1 + $0x48] sm:$0xff]  ;;  %v2689_v33 = vpack.c.bf16 %v248_v29, %v244_v28  ;;  %v247_v34 = vld [vmem:[#allocation7 + $0x120] sm:$0xff]  ;;  %v233_v51 = vld [vmem:[#allocation7 + $0xb0] sm:$0xff]  ;;  %p3254_p10 = pnand %p3253_p9, %p3247_p6 }
  0x79   :  { %v252_v35 = vld [vmem:[#allocation7 + $0x148] sm:$0xff]  ;;  %v2691_v36 = vpack.c.bf16 %v247_v34, %v243_v30  ;;  %v2670_v38 = vpack.c.bf16 %v132_v32, %v131_v31  ;;  %v251_v41 = vld [vmem:[#allocation7 + $0x140] sm:$0xff]  ;;  %v238_v53 = vld [vmem:[#allocation7 + $0xd8] sm:$0xff]  ;;  %v2699_v56 = vpack.c.bf16 %v233_v51, %v229_v50  ;;  %v115_v30 = vlaneseq }
  0x7a   :  { %v256_v37 = vld [vmem:[#allocation7 + $0x168] sm:$0xff]  ;;  %v255_v42 = vld [vmem:[#allocation7 + $0x160] sm:$0xff]  ;;  %v242_v54 = vld [vmem:[#allocation7 + $0xf8] sm:$0xff] }
  0x7b   :  { %2665 = vmatpush3.bf16.msra.mxu0 %v2664_v16  ;;  %2688 = vmatpush1.bf16.msra.mxu1 %v2687_v26  ;;  %v2693_v40 = vpack.c.bf16 %v256_v37, %v252_v35  ;;  %v2695_v46 = vpack.c.bf16 %v255_v42, %v251_v41  ;;  %v135_v48 = vld [vmem:[%s3661_s1 + $0x60] sm:$0xff]  ;;  %v136_v52 = vld [vmem:[%s3661_s1 + $0x68] sm:$0xff]  ;;  %v137_v58 = vld [vmem:[%s3661_s1 + $0x70] sm:$0xff]  ;;  %v2701_v59 = vpack.c.bf16 %v242_v54, %v238_v53 }
  0x7c   :  { %2666 = vmatprep.subr.bf16.mxu0 %v3293_v1  ;;  %2690 = vmatprep.subr.bf16.mxu1 %v2689_v33  ;;  %v209_v55 = vld [vmem:[#allocation2] sm:$0xff]  ;;  %v2676_v57 = vpack.c.bf16 %v136_v52, %v135_v48  ;;  %v237_v60 = vld [vmem:[#allocation7 + $0xd0] sm:$0xff]  ;;  %v138_v62 = vld [vmem:[%s3661_s1 + $0x78] sm:$0xff]  ;;  %v116_v33 = vand.u32 127, %v115_v30 }
  0x7d   :  { %v241_v61 = vld [vmem:[#allocation7 + $0xf0] sm:$0xff]  ;;  %v246_v63 = vld [vmem:[#allocation7 + $0x118] sm:$0xff]  ;;  %v629_v2 = vld [vmem:[#allocation7 + $0x388] sm:$0xff]  ;;  %v2679_v5 = vpack.c.bf16 %v138_v62, %v137_v58 }
  0x7e   :  { %v250_v0 = vld [vmem:[#allocation7 + $0x138] sm:$0xff]  ;;  %v633_v3 = vld [vmem:[#allocation7 + $0x3a8] sm:$0xff]  ;;  %v2703_v4 = vpack.c.bf16 %v241_v61, %v237_v60  ;;  %v245_v7 = vld [vmem:[#allocation7 + $0x110] sm:$0xff] }
  0x7f   :  { %2668 = vmatpush3.bf16.msra.mxu0 %v2667_v27  ;;  %2692 = vmatpush1.bf16.msra.mxu1 %v2691_v36  ;;  %v2705_v6 = vpack.c.bf16 %v250_v0, %v246_v63  ;;  %v249_v9 = vld [vmem:[#allocation7 + $0x130] sm:$0xff]  ;;  %v2729_v10 = vpack.c.bf16 %v633_v3, %v629_v2  ;;  %v254_v11 = vld [vmem:[#allocation7 + $0x158] sm:$0xff]  ;;  %v212_v17 = vld [vmem:[#allocation7 + $0x8] sm:$0xff] }
  0x80   :  { %2669 = vmatprep.subr.bf16.mxu0 %v3293_v1  ;;  %2694 = vmatprep.subr.bf16.mxu1 %v2693_v40  ;;  %v258_v12 = vld [vmem:[#allocation7 + $0x178] sm:$0xff]  ;;  %v2707_v13 = vpack.c.bf16 %v249_v9, %v245_v7  ;;  %v253_v15 = vld [vmem:[#allocation7 + $0x150] sm:$0xff]  ;;  %v216_v18 = vld [vmem:[#allocation7 + $0x28] sm:$0xff] }
  0x81   :  { %v2709_v14 = vpack.c.bf16 %v258_v12, %v254_v11  ;;  %v257_v16 = vld [vmem:[#allocation7 + $0x170] sm:$0xff]  ;;  %v2713_v20 = vpack.c.bf16 %v216_v18, %v212_v17  ;;  %v211_v21 = vld [vmem:[#allocation7] sm:$0xff]  ;;  %v220_v23 = vld [vmem:[#allocation7 + $0x48] sm:$0xff] }
  0x82   :  { %v2711_v19 = vpack.c.bf16 %v257_v16, %v253_v15  ;;  %v215_v22 = vld [vmem:[#allocation7 + $0x20] sm:$0xff]  ;;  %v224_v24 = vld [vmem:[#allocation7 + $0x68] sm:$0xff]  ;;  %v631_v54 = vld [vmem:[#allocation7 + $0x398] sm:$0xff] }
  0x83   :  { %2671 = vmatpush3.bf16.msra.mxu0 %v2670_v38  ;;  %2696 = vmatpush1.bf16.msra.mxu1 %v2695_v46  ;;  %v2715_v25 = vpack.c.bf16 %v215_v22, %v211_v21  ;;  %v2717_v26 = vpack.c.bf16 %v224_v24, %v220_v23  ;;  %v219_v27 = vld [vmem:[#allocation7 + $0x40] sm:$0xff]  ;;  %v637_v34 = vld [vmem:[#allocation7 + $0x3c8] sm:$0xff]  ;;  %v630_v58 = vld [vmem:[#allocation7 + $0x390] sm:$0xff] }
  0x84   :  { %2672 = vmatprep.subr.bf16.mxu0 %v3293_v1  ;;  %2698 = vmatprep.subr.bf16.mxu1 %v2697_v49  ;;  %v223_v28 = vld [vmem:[#allocation7 + $0x60] sm:$0xff]  ;;  %v641_v35 = vld [vmem:[#allocation7 + $0x3e8] sm:$0xff]  ;;  %v639_v60 = vld [vmem:[#allocation7 + $0x3d8] sm:$0xff] }
  0x85   :  { %v2719_v29 = vpack.c.bf16 %v223_v28, %v219_v27  ;;  %v628_v31 = vld [vmem:[#allocation7 + $0x380] sm:$0xff]  ;;  %v2733_v38 = vpack.c.bf16 %v641_v35, %v637_v34  ;;  %v645_v41 = vld [vmem:[#allocation7 + $0x408] sm:$0xff]  ;;  %v643_v61 = vld [vmem:[#allocation7 + $0x3f8] sm:$0xff] }
  0x86   :  { %2481 = vmatmul.mubr.msk.f32.vlgmr.msra.gmra.mrb[0].mxu1 %vm259_vm1, %v209_v55  ;;  %v632_v32 = vld [vmem:[#allocation7 + $0x3a0] sm:$0xff]  ;;  %v649_v42 = vld [vmem:[#allocation7 + $0x428] sm:$0xff]  ;;  %v2749_v0 = vpack.c.bf16 %v643_v61, %v639_v60  ;;  %v638_v2 = vld [vmem:[#allocation7 + $0x3d0] sm:$0xff] }
  0x87   :  { %2674 = vmatpush3.bf16.msra.mxu0 %v2673_v47  ;;  %2700 = vmatpush1.bf16.msra.mxu1 %v2699_v56  ;;  %v2731_v36 = vpack.c.bf16 %v632_v32, %v628_v31  ;;  %v636_v39 = vld [vmem:[#allocation7 + $0x3c0] sm:$0xff]  ;;  %v2737_v45 = vpack.c.bf16 %v649_v42, %v645_v41  ;;  %v653_v48 = vld [vmem:[#allocation7 + $0x448] sm:$0xff]  ;;  %v642_v3 = vld [vmem:[#allocation7 + $0x3f0] sm:$0xff] }
  0x88   :  { %2675 = vmatprep.subr.bf16.mxu0 %v3293_v1  ;;  %398 = vmatprep.mubr.f32.mxu1 %v3295_v8  ;;  %v640_v40 = vld [vmem:[#allocation7 + $0x3e0] sm:$0xff]  ;;  %v657_v49 = vld [vmem:[#allocation7 + $0x468] sm:$0xff]  ;;  %v646_v9 = vld [vmem:[#allocation7 + $0x410] sm:$0xff] }
  0x89   :  { %2702 = vmatprep.subr.bf16.mxu1 %v2701_v59  ;;  %v2735_v44 = vpack.c.bf16 %v640_v40, %v636_v39  ;;  %v644_v46 = vld [vmem:[#allocation7 + $0x400] sm:$0xff]  ;;  %v2741_v51 = vpack.c.bf16 %v657_v49, %v653_v48  ;;  %v634_v59 = vld [vmem:[#allocation7 + $0x3b0] sm:$0xff]  ;;  %v608_v62 = vld [vmem:[#allocation2 + $0x8] sm:$0xff] }
  0x8a   :  { %v648_v47 = vld [vmem:[#allocation7 + $0x420] sm:$0xff]  ;;  %v2747_v63 = vpack.c.bf16 %v634_v59, %v630_v58  ;;  %v655_v11 = vld [vmem:[#allocation7 + $0x458] sm:$0xff]  ;;  %v654_v15 = vld [vmem:[#allocation7 + $0x450] sm:$0xff] }
  0x8b   :  { %2677 = vmatpush3.bf16.msra.mxu0 %v2676_v57  ;;  %2704 = vmatpush1.bf16.msra.mxu1 %v2703_v4  ;;  %v2739_v50 = vpack.c.bf16 %v648_v47, %v644_v46  ;;  %v652_v52 = vld [vmem:[#allocation7 + $0x440] sm:$0xff]  ;;  %v647_v4 = vld [vmem:[#allocation7 + $0x418] sm:$0xff]  ;;  %v658_v16 = vld [vmem:[#allocation7 + $0x470] sm:$0xff] }
  0x8c   :  { %2678 = vmatprep.subr.bf16.mxu0 %v3293_v1  ;;  %2706 = vmatprep.subr.bf16.mxu1 %v2705_v6  ;;  %v656_v53 = vld [vmem:[#allocation7 + $0x460] sm:$0xff]  ;;  %v2751_v6 = vpack.c.bf16 %v642_v3, %v638_v2  ;;  %v659_v12 = vld [vmem:[#allocation7 + $0x478] sm:$0xff]  ;;  %v614_v21 = vld [vmem:[#allocation7 + $0x310] sm:$0xff] }
  0x8d   :  { %v2743_v56 = vpack.c.bf16 %v656_v53, %v652_v52  ;;  %v615_v17 = vld [vmem:[#allocation7 + $0x318] sm:$0xff]  ;;  %v618_v22 = vld [vmem:[#allocation7 + $0x330] sm:$0xff]  ;;  %v1641_v34 = vld [vmem:[#allocation7 + $0xb08] sm:$0xff] }
  0x8e   :  { %v619_v18 = vld [vmem:[#allocation7 + $0x338] sm:$0xff]  ;;  %v622_v27 = vld [vmem:[#allocation7 + $0x350] sm:$0xff]  ;;  %v1645_v35 = vld [vmem:[#allocation7 + $0xb28] sm:$0xff] }
  0x8f   :  { %2680 = vmatpush3.bf16.msra.mxu0 %v2679_v5  ;;  %2708 = vmatpush1.bf16.msra.mxu1 %v2707_v13  ;;  %v651_v5 = vld [vmem:[#allocation7 + $0x438] sm:$0xff]  ;;  %v626_v28 = vld [vmem:[#allocation7 + $0x370] sm:$0xff]  ;;  %v1640_v41 = vld [vmem:[#allocation7 + $0xb00] sm:$0xff] }
  0x90   :  { %2730 = vmatprep.subr.bf16.mxu0 %v2729_v10  ;;  %2710 = vmatprep.subr.bf16.mxu1 %v2709_v14  ;;  %v2753_v7 = vpack.c.bf16 %v651_v5, %v647_v4  ;;  %v650_v10 = vld [vmem:[#allocation7 + $0x430] sm:$0xff]  ;;  %v2757_v14 = vpack.c.bf16 %v659_v12, %v655_v11  ;;  %v623_v23 = vld [vmem:[#allocation7 + $0x358] sm:$0xff]  ;;  %v1644_v42 = vld [vmem:[#allocation7 + $0xb20] sm:$0xff] }
  0x91   :  { %v2755_v13 = vpack.c.bf16 %v650_v10, %v646_v9  ;;  %v627_v24 = vld [vmem:[#allocation7 + $0x378] sm:$0xff]  ;;  %v225_v46 = vld [vmem:[#allocation7 + $0x70] sm:$0xff]  ;;  %v2875_v47 = vpack.c.bf16 %v1644_v42, %v1640_v41  ;;  %v613_v49 = vld [vmem:[#allocation7 + $0x308] sm:$0xff] }
  0x92   :  { %v214_v31 = vld [vmem:[#allocation7 + $0x18] sm:$0xff]  ;;  %v620_v60 = vld [vmem:[#allocation7 + $0x340] sm:$0xff]  ;;  %v1051_v9 = vld [vmem:[#allocation7 + $0x848] sm:$0xff] }
  0x93   :  { %2712 = vmatpush1.bf16.msra.mxu1 %v2711_v19  ;;  %v2759_v19 = vpack.c.bf16 %v658_v16, %v654_v15  ;;  %v218_v32 = vld [vmem:[#allocation7 + $0x38] sm:$0xff]  ;;  %v624_v61 = vld [vmem:[#allocation7 + $0x360] sm:$0xff]  ;;  %v1055_v10 = vld [vmem:[#allocation7 + $0x868] sm:$0xff] }
  0x94   :  { %2714 = vmatprep.subr.bf16.mxu1 %v2713_v20  ;;  %v2769_v20 = vpack.c.bf16 %v619_v18, %v615_v17  ;;  %v222_v39 = vld [vmem:[#allocation7 + $0x58] sm:$0xff]  ;;  %v1042_v3 = vld [vmem:[#allocation7 + $0x800] sm:$0xff]  ;;  %v1649_v11 = vld [vmem:[#allocation7 + $0xb48] sm:$0xff]  ;;  %v2781_v12 = vpack.c.bf16 %v1055_v10, %v1051_v9 }
  0x95   :  { %v226_v40 = vld [vmem:[#allocation7 + $0x78] sm:$0xff]  ;;  %v1046_v4 = vld [vmem:[#allocation7 + $0x820] sm:$0xff]  ;;  %v1650_v9 = vld [vmem:[#allocation7 + $0xb50] sm:$0xff] }
  0x96   :  { %2482 = vmatmul.mubr.msk.f32.vlgmr.msra.gmra.mrb[2].mxu1 %vm259_vm1, %v209_v55  ;;  %v635_v55 = vld [vmem:[#allocation7 + $0x3b8] sm:$0xff]  ;;  %v2779_v5 = vpack.c.bf16 %v1046_v4, %v1042_v3  ;;  %v1054_v15 = vld [vmem:[#allocation7 + $0x860] sm:$0xff]  ;;  %v1056_v3 = vld [vmem:[#allocation7 + $0x870] sm:$0xff] }
  0x97   :  { %2716 = vmatpush1.bf16.msra.mxu1 %v2715_v25  ;;  %473 = vmatprep.mubr.f32.mxu1 %v3295_v8  ;;  %v2745_v57 = vpack.c.bf16 %v635_v55, %v631_v54  ;;  %v2771_v25 = vpack.c.bf16 %v618_v22, %v614_v21  ;;  %v612_v54 = vld [vmem:[#allocation7 + $0x300] sm:$0xff]  ;;  %v1059_v21 = vld [vmem:[#allocation7 + $0x888] sm:$0xff]  ;;  %v1654_v10 = vld [vmem:[#allocation7 + $0xb70] sm:$0xff] }
  0x98   :  { %2718 = vmatprep.subr.bf16.mxu1 %v2717_v26  ;;  %v2773_v26 = vpack.c.bf16 %v627_v24, %v623_v23  ;;  %v616_v55 = vld [vmem:[#allocation7 + $0x320] sm:$0xff]  ;;  %v1063_v22 = vld [vmem:[#allocation7 + $0x8a8] sm:$0xff] }
  0x99   :  { %v2763_v58 = vpack.c.bf16 %v616_v55, %v612_v54  ;;  %v1648_v18 = vld [vmem:[#allocation7 + $0xb40] sm:$0xff]  ;;  %v1657_v23 = vld [vmem:[#allocation7 + $0xb88] sm:$0xff]  ;;  %v2785_v24 = vpack.c.bf16 %v1063_v22, %v1059_v21  ;;  %v1642_v55 = vld [vmem:[#allocation7 + $0xb10] sm:$0xff] }
  0x9a   :  { %v1658_v21 = vld [vmem:[#allocation7 + $0xb90] sm:$0xff] }
  0x9b   :  { %2720 = vmatpush1.bf16.msra.mxu1 %v2719_v29  ;;  %v2775_v29 = vpack.c.bf16 %v626_v28, %v622_v27  ;;  %v1062_v27 = vld [vmem:[#allocation7 + $0x8a0] sm:$0xff]  ;;  %v1662_v22 = vld [vmem:[#allocation7 + $0xbb0] sm:$0xff] }
  0xf0   :  { %v119_v37 = vpop.permute.xlu0 %118 }
  0xf1   :  { %vm120_vm2 = vcmp.eq.s32.totalorder %v116_v33, %v119_v37  ;;  %v2721_v33 = vpack.c.bf16 %v218_v32, %v214_v31  ;;  %v213_v37 = vld [vmem:[#allocation7 + $0x10] sm:$0xff]  ;;  %v1656_v31 = vld [vmem:[#allocation7 + $0xb80] sm:$0xff] }
  0xf2   :  { %2598 = vmatmul.mubr.msk.f32.vlgmr.msra.gmra.mrb[0].mxu0 %vm120_vm2, %v3296_v43  ;;  %v1660_v32 = vld [vmem:[#allocation7 + $0xba0] sm:$0xff] }
  0xf3   :  { %2732 = vmatpush1.bf16.msra.mxu0 %v2731_v36  ;;  %727 = vmatprep.mubr.f32.mxu0 %v3295_v8  ;;  %v2873_v36 = vpack.c.bf16 %v1645_v35, %v1641_v34  ;;  %v1067_v34 = vld [vmem:[#allocation7 + $0x8c8] sm:$0xff] }
  0xf4   :  { %2734 = vmatprep.subr.bf16.mxu0 %v2733_v38  ;;  %2722 = vmatprep.subr.bf16.mxu1 %v2721_v33  ;;  %v217_v38 = vld [vmem:[#allocation7 + $0x30] sm:$0xff]  ;;  %v2883_v33 = vpack.c.bf16 %v1660_v32, %v1656_v31  ;;  %v1071_v35 = vld [vmem:[#allocation7 + $0x8e8] sm:$0xff] }
  0xf5   :  { %v2723_v43 = vpack.c.bf16 %v217_v38, %v213_v37  ;;  %v2789_v37 = vpack.c.bf16 %v1071_v35, %v1067_v34  ;;  %v1669_v38 = vld [vmem:[#allocation7 + $0xbe8] sm:$0xff]  ;;  %v1072_v31 = vld [vmem:[#allocation7 + $0x8f0] sm:$0xff] }
  0xf6   :  { %v1666_v34 = vld [vmem:[#allocation7 + $0xbd0] sm:$0xff] }
  0xf7   :  { %2736 = vmatpush1.bf16.msra.mxu0 %v2735_v44  ;;  %v2725_v44 = vpack.c.bf16 %v226_v40, %v222_v39  ;;  %v1066_v39 = vld [vmem:[#allocation7 + $0x8c0] sm:$0xff]  ;;  %v1670_v35 = vld [vmem:[#allocation7 + $0xbf0] sm:$0xff] }
  0xf8   :  { %2738 = vmatprep.subr.bf16.mxu0 %v2737_v45  ;;  %v221_v45 = vld [vmem:[#allocation7 + $0x50] sm:$0xff]  ;;  %v1070_v40 = vld [vmem:[#allocation7 + $0x8e0] sm:$0xff] }
  0xf9   :  { %v2727_v52 = vpack.c.bf16 %v225_v46, %v221_v45  ;;  %v2791_v42 = vpack.c.bf16 %v1070_v40, %v1066_v39  ;;  %v1045_v46 = vld [vmem:[#allocation7 + $0x818] sm:$0xff]  ;;  %v1609_v39 = vld [vmem:[#allocation7 + $0x908] sm:$0xff] }
  0xfb   :  { %2740 = vmatpush1.bf16.msra.mxu0 %v2739_v50  ;;  %v617_v50 = vld [vmem:[#allocation7 + $0x328] sm:$0xff] }
  0xfc   :  { %2742 = vmatprep.subr.bf16.mxu0 %v2741_v51  ;;  %v2761_v53 = vpack.c.bf16 %v617_v50, %v613_v49  ;;  %v1647_v50 = vld [vmem:[#allocation7 + $0xb38] sm:$0xff] }
  0xff   :  { %2744 = vmatpush1.bf16.msra.mxu0 %v2743_v56  ;;  %v621_v56 = vld [vmem:[#allocation7 + $0x348] sm:$0xff] }
 0x100   :  { %2746 = vmatprep.subr.bf16.mxu0 %v2745_v57  ;;  %v625_v57 = vld [vmem:[#allocation7 + $0x368] sm:$0xff] }
 0x101   :  { %v2765_v59 = vpack.c.bf16 %v625_v57, %v621_v56  ;;  %v1646_v56 = vld [vmem:[#allocation7 + $0xb30] sm:$0xff] }
 0x102   :  { %2488 = vmatmul.mubr.msk.f32.vlgmr.msra.gmra.mrb[2].mxu0 %vm259_vm1, %v608_v62  ;;  %v3536_v57 = vld [vmem:[#allocation2 + $0x10] sm:$0xff] }
 0x103   :  { %2748 = vmatpush1.bf16.msra.mxu0 %v2747_v63  ;;  %798 = vmatprep.mubr.f32.mxu0 %v3295_v8  ;;  %v1047_v63 = vld [vmem:[#allocation7 + $0x828] sm:$0xff] }
 0x104   :  { %2750 = vmatprep.subr.bf16.mxu0 %v2749_v0  ;;  %v2767_v0 = vpack.c.bf16 %v624_v61, %v620_v60  ;;  %v1053_v60 = vld [vmem:[#allocation7 + $0x858] sm:$0xff] }
 0x105   :  { %v1057_v61 = vld [vmem:[#allocation7 + $0x878] sm:$0xff] }
 0x107   :  { %2752 = vmatpush1.bf16.msra.mxu0 %v2751_v6 }
 0x108   :  { %2754 = vmatprep.subr.bf16.mxu0 %v2753_v7 }
 0x10b   :  { %2756 = vmatpush1.bf16.msra.mxu0 %v2755_v13  ;;  %v1653_v13 = vld [vmem:[#allocation7 + $0xb68] sm:$0xff] }
 0x10c   :  { %2758 = vmatprep.subr.bf16.mxu0 %v2757_v14  ;;  %v1050_v14 = vld [vmem:[#allocation7 + $0x840] sm:$0xff]  ;;  %v2877_v16 = vpack.c.bf16 %v1653_v13, %v1649_v11  ;;  %v2895_v11 = vpack.c.bf16 %v1654_v10, %v1650_v9  ;;  %v1065_v13 = vld [vmem:[#allocation7 + $0x8b8] sm:$0xff] }
 0x10d   :  { %v2783_v17 = vpack.c.bf16 %v1054_v15, %v1050_v14  ;;  %v1659_v14 = vld [vmem:[#allocation7 + $0xb98] sm:$0xff]  ;;  %v1624_v10 = vld [vmem:[#allocation7 + $0x980] sm:$0xff] }
 0x10f   :  { %2760 = vmatpush1.bf16.msra.mxu0 %v2759_v19  ;;  %v1652_v19 = vld [vmem:[#allocation7 + $0xb60] sm:$0xff] }
 0x110   :  { %2770 = vmatprep.subr.bf16.mxu0 %v2769_v20  ;;  %v2879_v20 = vpack.c.bf16 %v1652_v19, %v1648_v18  ;;  %v1064_v18 = vld [vmem:[#allocation7 + $0x8b0] sm:$0xff] }
 0x112   :  { %2489 = vmatmul.mubr.msk.f32.vlgmr.msra.gmra.mrb[4].mxu0 %vm259_vm1, %v608_v62  ;;  %v1043_v62 = vld [vmem:[#allocation7 + $0x808] sm:$0xff] }
 0x113   :  { %2772 = vmatpush1.bf16.msra.mxu0 %v2771_v25  ;;  %940 = vmatprep.mubr.f32.mxu0 %v3295_v8  ;;  %v2777_v2 = vpack.c.bf16 %v1047_v63, %v1043_v62  ;;  %v1661_v25 = vld [vmem:[#allocation7 + $0xba8] sm:$0xff]  ;;  %v1651_v62 = vld [vmem:[#allocation7 + $0xb58] sm:$0xff]  ;;  %v2797_v63 = vpack.c.bf16 %v1057_v61, %v1053_v60  ;;  %v1616_v60 = vld [vmem:[#allocation7 + $0x940] sm:$0xff] }
 0x114   :  { %2774 = vmatprep.subr.bf16.mxu0 %v2773_v26  ;;  %v1058_v26 = vld [vmem:[#allocation7 + $0x880] sm:$0xff]  ;;  %v2881_v28 = vpack.c.bf16 %v1661_v25, %v1657_v23  ;;  %v2899_v23 = vpack.c.bf16 %v1662_v22, %v1658_v21  ;;  %v1073_v25 = vld [vmem:[#allocation7 + $0x8f8] sm:$0xff] }
 0x115   :  { %v1620_v61 = vld [vmem:[#allocation7 + $0x960] sm:$0xff] }
 0x116   :  { %v1632_v21 = vld [vmem:[#allocation7 + $0x9c0] sm:$0xff] }
 0x117   :  { %2776 = vmatpush1.bf16.msra.mxu0 %v2775_v29  ;;  %v2787_v29 = vpack.c.bf16 %v1062_v27, %v1058_v26  ;;  %v1667_v26 = vld [vmem:[#allocation7 + $0xbd8] sm:$0xff] }
 0x118   :  { %2874 = vmatprep.subr.bf16.mxu0 %v2873_v36  ;;  %v1665_v36 = vld [vmem:[#allocation7 + $0xbc8] sm:$0xff] }
 0x119   :  { %v2885_v41 = vpack.c.bf16 %v1669_v38, %v1665_v36  ;;  %v2903_v36 = vpack.c.bf16 %v1670_v35, %v1666_v34  ;;  %v1015_v38 = vld [vmem:[#allocation7 + $0x628] sm:$0xff]  ;;  %v551_v34 = vld [vmem:[#allocation8] sm:$0xf] }
 0x1c5   :  { %v205_v48 = vpop.f32.mrb[0].mxu0 }
 0x1c6   :  { %v2599_v51 = vpop.f32.mrb[1].mxu0  ;;  %2483 = vmatmul.mubr.msk.f32.vlgmr.msra.gmra.mrb[0].mxu1 %vm405_vm3, %v205_v48  ;;  %2491 = vmatmul.mubr.msk.f32.vlgmr.msra.gmra.mrb[4].mxu0 %vm405_vm3, %v205_v48 }
 0x1c7   :  { %2724 = vmatpush1.bf16.msra.mxu1 %v2723_v43  ;;  %544 = vmatprep.mubr.f32.mxu1 %v3295_v8  ;;  %v1664_v43 = vld [vmem:[#allocation7 + $0xbc0] sm:$0xff]  ;;  %v1044_v51 = vld [vmem:[#allocation7 + $0x810] sm:$0xff] }
 0x1c8   :  { %2726 = vmatprep.subr.bf16.mxu1 %v2725_v44  ;;  %2876 = vmatpush1.bf16.msra.mxu0 %v2875_v47  ;;  %v1668_v44 = vld [vmem:[#allocation7 + $0xbe0] sm:$0xff]  ;;  %v1049_v47 = vld [vmem:[#allocation7 + $0x838] sm:$0xff] }
 0x1c9   :  { %1739 = vmatprep.mubr.f32.mxu0 %v3295_v8  ;;  %2878 = vmatprep.subr.bf16.mxu0 %v2877_v16  ;;  %v2887_v45 = vpack.c.bf16 %v1668_v44, %v1664_v43  ;;  %v2793_v49 = vpack.c.bf16 %v1049_v47, %v1045_v46  ;;  %v1663_v16 = vld [vmem:[#allocation7 + $0xbb8] sm:$0xff]  ;;  %v1014_v43 = vld [vmem:[#allocation7 + $0x620] sm:$0xff] }
 0x1ca   :  { %v2897_v19 = vpack.c.bf16 %v1663_v16, %v1659_v14  ;;  %v1608_v46 = vld [vmem:[#allocation7 + $0x900] sm:$0xff]  ;;  %v1039_v14 = vld [vmem:[#allocation7 + $0x6e8] sm:$0xff] }
 0x1cb   :  { %2728 = vmatpush1.bf16.msra.mxu1 %v2727_v52  ;;  %v1048_v52 = vld [vmem:[#allocation7 + $0x830] sm:$0xff]  ;;  %v1612_v47 = vld [vmem:[#allocation7 + $0x920] sm:$0xff]  ;;  %v1637_v16 = vld [vmem:[#allocation7 + $0x9e8] sm:$0xff] }
 0x1cc   :  { %2762 = vmatprep.subr.bf16.mxu1 %v2761_v53  ;;  %2880 = vmatpush1.bf16.msra.mxu0 %v2879_v20  ;;  %v2795_v54 = vpack.c.bf16 %v1048_v52, %v1044_v51  ;;  %v1617_v51 = vld [vmem:[#allocation7 + $0x948] sm:$0xff] }
 0x1cd   :  { %2882 = vmatprep.subr.bf16.mxu0 %v2881_v28  ;;  %v1671_v28 = vld [vmem:[#allocation7 + $0xbf8] sm:$0xff] }
 0x1ce   :  { %2484 = vmatmul.mubr.msk.f32.vlgmr.msra.gmra.mrb[2].mxu1 %vm405_vm3, %v205_v48  ;;  %v2901_v32 = vpack.c.bf16 %v1671_v28, %v1667_v26  ;;  %v1611_v28 = vld [vmem:[#allocation7 + $0x918] sm:$0xff] }
 0x1cf   :  { %2764 = vmatpush1.bf16.msra.mxu1 %v2763_v58  ;;  %869 = vmatprep.mubr.f32.mxu1 %v3295_v8  ;;  %v3538_v58 = vld [vmem:[#allocation2 + $0x18] sm:$0xff] }
 0x1d0   :  { %2766 = vmatprep.subr.bf16.mxu1 %v2765_v59  ;;  %2884 = vmatpush1.bf16.msra.mxu0 %v2883_v33  ;;  %v2891_v59 = vpack.c.bf16 %v1646_v56, %v1642_v55  ;;  %v1022_v55 = vld [vmem:[#allocation7 + $0x660] sm:$0xff] }
 0x1d1   :  { %2886 = vmatprep.subr.bf16.mxu0 %v2885_v41  ;;  %v1613_v41 = vld [vmem:[#allocation7 + $0x928] sm:$0xff] }
 0x1d2   :  { %v2905_v44 = vpack.c.bf16 %v1613_v41, %v1609_v39 }
 0x1d3   :  { %2768 = vmatpush1.bf16.msra.mxu1 %v2767_v0  ;;  %v1655_v0 = vld [vmem:[#allocation7 + $0xb78] sm:$0xff] }
 0x1d4   :  { %2778 = vmatprep.subr.bf16.mxu1 %v2777_v2  ;;  %2888 = vmatpush1.bf16.msra.mxu0 %v2887_v45  ;;  %v1052_v2 = vld [vmem:[#allocation7 + $0x850] sm:$0xff]  ;;  %v2893_v4 = vpack.c.bf16 %v1655_v0, %v1651_v62  ;;  %v1027_v62 = vld [vmem:[#allocation7 + $0x688] sm:$0xff] }
 0x1d5   :  { %v3530_v6 = vpop.f32.mrb[2].mxu0  ;;  %v1625_v0 = vld [vmem:[#allocation7 + $0x988] sm:$0xff] }
 0x1d6   :  { %2490 = vmatmul.mubr.msk.f32.vlgmr.msra.gmra.mrb[4].mxu1 %vm405_vm3, %v205_v48  ;;  %v3533_v7 = vpop.f32.mrb[3].mxu0  ;;  %v1643_v48 = vld [vmem:[#allocation7 + $0xb18] sm:$0xff] }
 0x1d7   :  { %2780 = vmatpush1.bf16.msra.mxu1 %v2779_v5  ;;  %1141 = vmatprep.mubr.f32.mxu1 %v3295_v8  ;;  %v2889_v53 = vpack.c.bf16 %v1647_v50, %v1643_v48  ;;  %v2799_v5 = vpack.c.bf16 %v1056_v3, %v1052_v2  ;;  %v2907_v48 = vpack.c.bf16 %v1612_v47, %v1608_v46  ;;  %v1023_v50 = vld [vmem:[#allocation7 + $0x668] sm:$0xff]  ;;  %v1026_v3 = vld [vmem:[#allocation7 + $0x680] sm:$0xff] }
 0x1d8   :  { %2782 = vmatprep.subr.bf16.mxu1 %v2781_v12  ;;  %2506 = vmatmul.mubr.msk.f32.vlgmr.msra.gmra.mrb[6].mxu0 %vm259_vm1, %v3538_v58  ;;  %v1061_v12 = vld [vmem:[#allocation7 + $0x898] sm:$0xff]  ;;  %v1629_v2 = vld [vmem:[#allocation7 + $0x9a8] sm:$0xff] }
 0x1d9   :  { %2890 = vmatprep.subr.bf16.mxu0 %v2889_v53  ;;  %1810 = vmatprep.mubr.f32.mxu0 %v3295_v8  ;;  %v2801_v15 = vpack.c.bf16 %v1065_v13, %v1061_v12  ;;  %v1621_v53 = vld [vmem:[#allocation7 + $0x968] sm:$0xff] }
 0x1da   :  { %2892 = vmatpush1.bf16.msra.mxu0 %v2891_v59  ;;  %v2909_v56 = vpack.c.bf16 %v1621_v53, %v1617_v51  ;;  %v1035_v12 = vld [vmem:[#allocation7 + $0x6c8] sm:$0xff] }
 0x1db   :  { %2784 = vmatpush1.bf16.msra.mxu1 %v2783_v17  ;;  %2894 = vmatprep.subr.bf16.mxu0 %v2893_v4  ;;  %v1060_v17 = vld [vmem:[#allocation7 + $0x890] sm:$0xff]  ;;  %v1030_v4 = vld [vmem:[#allocation7 + $0x6a0] sm:$0xff] }
 0x1dc   :  { %2786 = vmatprep.subr.bf16.mxu1 %v2785_v24  ;;  %v2803_v20 = vpack.c.bf16 %v1064_v18, %v1060_v17  ;;  %v1069_v24 = vld [vmem:[#allocation7 + $0x8d8] sm:$0xff]  ;;  %v2819_v9 = vpack.c.bf16 %v1030_v4, %v1026_v3  ;;  %v2821_v17 = vpack.c.bf16 %v1039_v14, %v1035_v12 }
 0x1dd   :  { %v2805_v27 = vpack.c.bf16 %v1073_v25, %v1069_v24  ;;  %v1013_v24 = vld [vmem:[#allocation7 + $0x618] sm:$0xff] }
 0x1de   :  { %2896 = vmatpush1.bf16.msra.mxu0 %v2895_v11  ;;  %v1628_v11 = vld [vmem:[#allocation7 + $0x9a0] sm:$0xff]  ;;  %v1017_v25 = vld [vmem:[#allocation7 + $0x638] sm:$0xff] }
 0x1df   :  { %2788 = vmatpush1.bf16.msra.mxu1 %v2787_v29  ;;  %2898 = vmatprep.subr.bf16.mxu0 %v2897_v19  ;;  %v1068_v29 = vld [vmem:[#allocation7 + $0x8d0] sm:$0xff]  ;;  %v2915_v13 = vpack.c.bf16 %v1628_v11, %v1624_v10  ;;  %v1034_v19 = vld [vmem:[#allocation7 + $0x6c0] sm:$0xff] }
 0x1e0   :  { %2790 = vmatprep.subr.bf16.mxu1 %v2789_v37  ;;  %v2807_v33 = vpack.c.bf16 %v1072_v31, %v1068_v29  ;;  %v1011_v37 = vld [vmem:[#allocation7 + $0x608] sm:$0xff]  ;;  %v1615_v29 = vld [vmem:[#allocation7 + $0x938] sm:$0xff] }
 0x1e1   :  { %v2809_v40 = vpack.c.bf16 %v1015_v38, %v1011_v37  ;;  %v2921_v31 = vpack.c.bf16 %v1615_v29, %v1611_v28  ;;  %v1610_v28 = vld [vmem:[#allocation7 + $0x910] sm:$0xff] }
 0x1e2   :  { %2900 = vmatpush1.bf16.msra.mxu0 %v2899_v23  ;;  %v1636_v23 = vld [vmem:[#allocation7 + $0x9e0] sm:$0xff]  ;;  %v1614_v29 = vld [vmem:[#allocation7 + $0x930] sm:$0xff] }
 0x1e3   :  { %2792 = vmatpush1.bf16.msra.mxu1 %v2791_v42  ;;  %2902 = vmatprep.subr.bf16.mxu0 %v2901_v32  ;;  %v1010_v42 = vld [vmem:[#allocation7 + $0x600] sm:$0xff]  ;;  %v2919_v26 = vpack.c.bf16 %v1636_v23, %v1632_v21  ;;  %v554_v32 = vshrl.u32 %v115_v30, 7 }
 0x1e4   :  { %2794 = vmatprep.subr.bf16.mxu1 %v2793_v49  ;;  %v2811_v45 = vpack.c.bf16 %v1014_v43, %v1010_v42  ;;  %v1019_v49 = vld [vmem:[#allocation7 + $0x648] sm:$0xff] }
 0x1e5   :  { %v2813_v52 = vpack.c.bf16 %v1023_v50, %v1019_v49  ;;  %v3555_v35 = vsub.s32 1, %v554_v32  ;;  %v3562_v47 = vsub.s32 3, %v554_v32 }
 0x1e6   :  { %2496 = vmatmul.mubr.msk.f32.vlgmr.msra.gmra.mrb[6].mxu1 %vm259_vm1, %v3536_v57  ;;  %2904 = vmatpush1.bf16.msra.mxu0 %v2903_v36 }
 0x1e7   :  { %2796 = vmatpush1.bf16.msra.mxu1 %v2795_v54  ;;  %1212 = vmatprep.mubr.f32.mxu1 %v3295_v8  ;;  %v1018_v54 = vld [vmem:[#allocation7 + $0x640] sm:$0xff]  ;;  %v560_v37 = vrot.slane %v551_v34, %v3555_v35  ;;  %v568_v49 = vrot.slane %v551_v34, %v3562_v47 }
 0x1e8   :  { %2798 = vmatprep.subr.bf16.mxu1 %v2797_v63  ;;  %2906 = vmatprep.subr.bf16.mxu0 %v2905_v44  ;;  %v2815_v59 = vpack.c.bf16 %v1022_v55, %v1018_v54  ;;  %v1031_v63 = vld [vmem:[#allocation7 + $0x6a8] sm:$0xff]  ;;  %v948_v54 = vld [vmem:[#allocation8 + $0x4] sm:$0xf] }
 0x1e9   :  { %2507 = vmatmul.mubr.msk.f32.vlgmr.msra.gmra.mrb[8].mxu0 %vm259_vm1, %v3538_v58  ;;  %v2817_v58 = vpack.c.bf16 %v1031_v63, %v1027_v62  ;;  %v965_v10 = vrot.slane %v948_v54, %v3562_v47 }
 0x1ea   :  { %2908 = vmatpush1.bf16.msra.mxu0 %v2907_v48  ;;  %1881 = vmatprep.mubr.f32.mxu0 %v3295_v8 }
 0x1eb   :  { %2800 = vmatpush1.bf16.msra.mxu1 %v2799_v5  ;;  %2910 = vmatprep.subr.bf16.mxu0 %v2909_v56  ;;  %v2913_v5 = vpack.c.bf16 %v1629_v2, %v1625_v0 }
 0x1ec   :  { %2802 = vmatprep.subr.bf16.mxu1 %v2801_v15  ;;  %v1633_v15 = vld [vmem:[#allocation7 + $0x9c8] sm:$0xff] }
 0x1ed   :  { %v2917_v18 = vpack.c.bf16 %v1637_v16, %v1633_v15  ;;  %v210_v15 = vld [vmem:[#allocation5] sm:$0xff] }
 0x1ef   :  { %2804 = vmatpush1.bf16.msra.mxu1 %v2803_v20  ;;  %v1038_v20 = vld [vmem:[#allocation7 + $0x6e0] sm:$0xff] }
 0x1f0   :  { %2806 = vmatprep.subr.bf16.mxu1 %v2805_v27  ;;  %v2823_v22 = vpack.c.bf16 %v1038_v20, %v1034_v19  ;;  %v2825_v27 = vpack.c.bf16 %v1017_v25, %v1013_v24  ;;  %v1012_v25 = vld [vmem:[#allocation7 + $0x610] sm:$0xff] }
 0x1f3   :  { %2808 = vmatpush1.bf16.msra.mxu1 %v2807_v33  ;;  %v3553_v33 = vsub.s32 0, %v554_v32 }
 0x1f4   :  { %2810 = vmatprep.subr.bf16.mxu1 %v2809_v40 }
 0x1f5   :  { %v556_v36 = vrot.slane %v551_v34, %v3553_v33  ;;  %v953_v56 = vrot.slane %v948_v54, %v3553_v33 }
 0x1f6   :  { %2497 = vmatmul.mubr.msk.f32.vlgmr.msra.gmra.mrb[8].mxu1 %vm259_vm1, %v3536_v57  ;;  %v2911_v57 = vpack.c.bf16 %v1620_v61, %v1616_v60  ;;  %v957_v61 = vrot.slane %v948_v54, %v3555_v35 }
 0x1f7   :  { %2812 = vmatpush1.bf16.msra.mxu1 %v2811_v45  ;;  %1286 = vmatprep.mubr.f32.mxu1 %v3295_v8  ;;  %v3559_v45 = vsub.s32 2, %v554_v32 }
 0x1f8   :  { %2814 = vmatprep.subr.bf16.mxu1 %v2813_v52  ;;  %2912 = vmatpush1.bf16.msra.mxu0 %v2911_v57 }
 0x1f9   :  { %2914 = vmatprep.subr.bf16.mxu0 %v2913_v5  ;;  %v564_v30 = vrot.slane %v551_v34, %v3559_v45  ;;  %v961_v4 = vrot.slane %v948_v54, %v3559_v45  ;;  %v1025_v34 = vld [vmem:[#allocation7 + $0x678] sm:$0xff] }
 0x1fb   :  { %2816 = vmatpush1.bf16.msra.mxu1 %v2815_v59 }
 0x1fc   :  { %2818 = vmatprep.subr.bf16.mxu1 %v2817_v58  ;;  %2916 = vmatpush1.bf16.msra.mxu0 %v2915_v13 }
 0x1fd   :  { %2918 = vmatprep.subr.bf16.mxu0 %v2917_v18 }
 0x1ff   :  { %2820 = vmatpush1.bf16.msra.mxu1 %v2819_v9 }
 0x200   :  { %2822 = vmatprep.subr.bf16.mxu1 %v2821_v17  ;;  %2920 = vmatpush1.bf16.msra.mxu0 %v2919_v26  ;;  %v1016_v26 = vld [vmem:[#allocation7 + $0x630] sm:$0xff] }
 0x201   :  { %2922 = vmatprep.subr.bf16.mxu0 %v2921_v31  ;;  %v1021_v31 = vld [vmem:[#allocation7 + $0x658] sm:$0xff] }
 0x203   :  { %2824 = vmatpush1.bf16.msra.mxu1 %v2823_v22 }
 0x204   :  { %2826 = vmatprep.subr.bf16.mxu1 %v2825_v27 }
 0x299   :  { %v475_v38 = vpop.f32.mrb[0].mxu1  ;;  %v942_v39 = vpop.f32.mrb[4].mxu0 }
 0x29a   :  { %v573_v40 = vadd.f32 %v556_v36, %v475_v38  ;;  %v477_v41 = vpop.f32.mrb[1].mxu1  ;;  %v944_v42 = vpop.f32.mrb[5].mxu0  ;;  %v972_v11 = vadd.f32 %v961_v4, %v942_v39  ;;  %v1619_v36 = vld [vmem:[#allocation7 + $0x958] sm:$0xff]  ;;  %v1626_v4 = vld [vmem:[#allocation7 + $0x990] sm:$0xff] }
 0x29b   :  { %v574_v43 = vadd.f32 %v560_v37, %v477_v41  ;;  %v973_v14 = vadd.f32 %v965_v10, %v944_v42  ;;  %v1623_v37 = vld [vmem:[#allocation7 + $0x978] sm:$0xff]  ;;  %v2923_v41 = vpack.c.bf16 %v1614_v29, %v1610_v28  ;;  %v1020_v42 = vld [vmem:[#allocation7 + $0x650] sm:$0xff]  ;;  %v1959_v29 = vld [vmem:[#allocation7 + $0xa00] sm:$0xff] }
 0x29c   :  { %v2485_v44 = vmul.f32 -1.442695, %v573_v40  ;;  %v2494_v16 = vmul.f32 -1.442695, %v972_v11  ;;  %v2827_v40 = vpack.c.bf16 %v1016_v26, %v1012_v25  ;;  %v1041_v10 = vld [vmem:[#allocation7 + $0x6f8] sm:$0xff]  ;;  %v1364_v25 = vld [vmem:[#allocation7 + $0x700] sm:$0xff] }
 0x29d   :  { %v2486_v46 = vmul.f32 -1.442695, %v574_v43  ;;  %v1024_v43 = vld [vmem:[#allocation7 + $0x670] sm:$0xff]  ;;  %v1635_v11 = vld [vmem:[#allocation7 + $0x9d8] sm:$0xff]  ;;  %v1368_v26 = vld [vmem:[#allocation7 + $0x720] sm:$0xff] }
 0x29e   :  { %3050 = vpow2.f32 %v2485_v44  ;;  %v610_v44 = vld [vmem:[#allocation5 + $0x8] sm:$0xff] }
 0x29f   :  { %3052 = vpow2.f32 %v2486_v46 }
 0x2a1   :  { %v546_v48 = vpop.f32.mrb[2].mxu1 }
 0x2a2   :  { %v575_v50 = vadd.f32 %v564_v30, %v546_v48  ;;  %v548_v51 = vpop.f32.mrb[3].mxu1  ;;  %v2829_v48 = vpack.c.bf16 %v1025_v34, %v1021_v31  ;;  %v1963_v31 = vld [vmem:[#allocation7 + $0xa20] sm:$0xff]  ;;  %v1377_v34 = vld [vmem:[#allocation7 + $0x768] sm:$0xff] }
 0x2a3   :  { %v576_v52 = vadd.f32 %v568_v49, %v548_v51  ;;  %v2925_v49 = vpack.c.bf16 %v1623_v37, %v1619_v36  ;;  %v1622_v51 = vld [vmem:[#allocation7 + $0x970] sm:$0xff]  ;;  %v1968_v36 = vld [vmem:[#allocation7 + $0xa48] sm:$0xff] }
 0x2a4   :  { %v2487_v53 = vmul.f32 -1.442695, %v575_v50  ;;  %v1618_v50 = vld [vmem:[#allocation7 + $0x950] sm:$0xff]  ;;  %v1972_v37 = vld [vmem:[#allocation7 + $0xa68] sm:$0xff] }
 0x2a5   :  { %3054 = vtanh.f32 %v576_v52  ;;  %v1029_v52 = vld [vmem:[#allocation7 + $0x698] sm:$0xff] }
 0x2a6   :  { %3056 = vpow2.f32 %v2487_v53 }
 0x2a8   :  { %v3051_v55 = vpop.eup %3050 }
 0x2a9   :  { %v586_v59 = vadd.f32 1.0, %v3051_v55  ;;  %v871_v60 = vpop.f32.mrb[4].mxu1  ;;  %v3053_v57 = vpop.eup %3052 }
 0x2aa   :  { %v872_v62 = vadd.f32 %v871_v60, %v3530_v6  ;;  %v873_v63 = vpop.f32.mrb[5].mxu1  ;;  %v587_v0 = vadd.f32 1.0, %v3053_v57  ;;  %v1631_v60 = vld [vmem:[#allocation7 + $0x9b8] sm:$0xff]  ;;  %v2831_v57 = vpack.c.bf16 %v1024_v43, %v1020_v42  ;;  %v1376_v42 = vld [vmem:[#allocation7 + $0x760] sm:$0xff] }
 0x2ab   :  { %3058 = vrcp.f32 %v586_v59  ;;  %v874_v58 = vadd.f32 %v873_v63, %v3533_v7  ;;  %v1627_v59 = vld [vmem:[#allocation7 + $0x998] sm:$0xff]  ;;  %v1028_v63 = vld [vmem:[#allocation7 + $0x690] sm:$0xff] }
 0x2ac   :  { %v970_v2 = vadd.f32 %v953_v56, %v872_v62  ;;  %3060 = vrcp.f32 %v587_v0  ;;  %v1033_v56 = vld [vmem:[#allocation7 + $0x6b8] sm:$0xff]  ;;  %v2927_v62 = vpack.c.bf16 %v1622_v51, %v1618_v50  ;;  %v1032_v0 = vld [vmem:[#allocation7 + $0x6b0] sm:$0xff]  ;;  %v1381_v50 = vld [vmem:[#allocation7 + $0x788] sm:$0xff] }
 0x2ad   :  { %v971_v3 = vadd.f32 %v957_v61, %v874_v58  ;;  %v1385_v51 = vld [vmem:[#allocation7 + $0x7a8] sm:$0xff] }
 0x2ae   :  { %v2492_v5 = vmul.f32 -1.442695, %v970_v2  ;;  %v2833_v2 = vpack.c.bf16 %v1033_v56, %v1029_v52  ;;  %v1976_v52 = vld [vmem:[#allocation7 + $0xa88] sm:$0xff] }
 0x2af   :  { %v2493_v9 = vmul.f32 -1.442695, %v971_v3  ;;  %v3055_v12 = vpop.eup %3054  ;;  %v2929_v3 = vpack.c.bf16 %v1631_v60, %v1627_v59  ;;  %v1380_v59 = vld [vmem:[#allocation7 + $0x780] sm:$0xff] }
 0x2b0   :  { %3062 = vpow2.f32 %v2492_v5  ;;  %v3057_v13 = vpop.eup %3056  ;;  %v1630_v5 = vld [vmem:[#allocation7 + $0x9b0] sm:$0xff]  ;;  %v1384_v60 = vld [vmem:[#allocation7 + $0x7a0] sm:$0xff] }
 0x2b1   :  { %3064 = vpow2.f32 %v2493_v9  ;;  %v588_v18 = vadd.f32 1.0, %v3057_v13  ;;  %v1037_v9 = vld [vmem:[#allocation7 + $0x6d8] sm:$0xff]  ;;  %v2835_v13 = vpack.c.bf16 %v1032_v0, %v1028_v63  ;;  %v1979_v63 = vld [vmem:[#allocation7 + $0xaa0] sm:$0xff]  ;;  %v1389_v0 = vld [vmem:[#allocation7 + $0x7c8] sm:$0xff] }
 0x2b2   :  { %3066 = vtanh.f32 %v973_v14  ;;  %v1036_v14 = vld [vmem:[#allocation7 + $0x6d0] sm:$0xff] }
 0x2b3   :  { %3068 = vpow2.f32 %v2494_v16  ;;  %v2837_v16 = vpack.c.bf16 %v1041_v10, %v1037_v9  ;;  %v1388_v9 = vld [vmem:[#allocation7 + $0x7c0] sm:$0xff] }
 0x2b4   :  { %3070 = vrcp.f32 %v588_v18  ;;  %v1638_v18 = vld [vmem:[#allocation7 + $0x9f0] sm:$0xff]  ;;  %v1392_v10 = vld [vmem:[#allocation7 + $0x7e0] sm:$0xff] }
 0x2b5   :  { %v3059_v6 = vpop.eup %3058 }
 0x2b6   :  { %v597_v17 = vmul.f32 %v3059_v6, %v3055_v12  ;;  %v3061_v7 = vpop.eup %3060  ;;  %v1639_v12 = vld [vmem:[#allocation7 + $0x9f8] sm:$0xff]  ;;  %v2931_v6 = vpack.c.bf16 %v1630_v5, %v1626_v4  ;;  %v2851_v4 = vpack.c.bf16 %v1384_v60, %v1380_v59 }
 0x2b7   :  { %v596_v19 = vmul.f32 %v3061_v7, %v210_v15  ;;  %v1040_v15 = vld [vmem:[#allocation7 + $0x6f0] sm:$0xff]  ;;  %v1986_v59 = vld [vmem:[#allocation7 + $0xad8] sm:$0xff] }
 0x2b8   :  { %v1634_v7 = vld [vmem:[#allocation7 + $0x9d0] sm:$0xff]  ;;  %v1990_v60 = vld [vmem:[#allocation7 + $0xaf8] sm:$0xff] }
 0x2b9   :  { %v598_v21 = vadd.f32 %v597_v17, %v596_v19  ;;  %v2933_v17 = vpack.c.bf16 %v1639_v12, %v1635_v11  ;;  %v1365_v19 = vld [vmem:[#allocation7 + $0x708] sm:$0xff] }
 0x2ba   :  { %v3063_v20 = vpop.eup %3062 }
 0x2bb   :  { %v3065_v22 = vpop.eup %3064  ;;  %v983_v23 = vadd.f32 1.0, %v3063_v20  ;;  %602 = vrot.lane.b32.xlu0 %v598_v21, %s3282_s3  ;;  %3072 = vtanh.f32 %v598_v21  ;;  %v1369_v20 = vld [vmem:[#allocation7 + $0x728] sm:$0xff] }
 0x2bc   :  { %v984_v24 = vadd.f32 1.0, %v3065_v22  ;;  %v3067_v27 = vpop.eup %3066  ;;  %v1960_v21 = vld [vmem:[#allocation7 + $0xa08] sm:$0xff] }
 0x2bd   :  { %3074 = vrcp.f32 %v983_v23  ;;  %v3069_v32 = vpop.eup %3068  ;;  %v1964_v22 = vld [vmem:[#allocation7 + $0xa28] sm:$0xff]  ;;  %v2839_v23 = vpack.c.bf16 %v1040_v15, %v1036_v14  ;;  %v1367_v14 = vld [vmem:[#allocation7 + $0x718] sm:$0xff] }
 0x2be   :  { %3076 = vrcp.f32 %v984_v24  ;;  %v3071_v38 = vpop.eup %3070  ;;  %v985_v54 = vadd.f32 1.0, %v3069_v32  ;;  %v2935_v24 = vpack.c.bf16 %v1638_v18, %v1634_v7  ;;  %v2937_v28 = vpack.c.bf16 %v1964_v22, %v1960_v21  ;;  %v1373_v32 = vld [vmem:[#allocation7 + $0x748] sm:$0xff]  ;;  %v1371_v15 = vld [vmem:[#allocation7 + $0x738] sm:$0xff] }
 0x2bf   :  { %v2855_v7 = vpack.c.bf16 %v1392_v10, %v1388_v9  ;;  %v2857_v21 = vpack.c.bf16 %v1371_v15, %v1367_v14  ;;  %v2206_v15 = vld [vmem:[#allocation10 + $0x50] sm:$0xff] }
 0x2c0   :  { %3078 = vrcp.f32 %v985_v54 }
 0x2c5   :  { %v3073_v39 = vpop.eup %3072 }
 0x2c6   :  { %v3572_v30 = vmul.f32 %v3073_v39, %v3071_v38  ;;  %v2843_v39 = vpack.c.bf16 %v1368_v26, %v1364_v25  ;;  %v1375_v25 = vld [vmem:[#allocation7 + $0x758] sm:$0xff] }
 0x2c7   :  { %v3075_v46 = vpop.eup %3074  ;;  %v1379_v26 = vld [vmem:[#allocation7 + $0x778] sm:$0xff] }
 0x2c8   :  { %v3077_v53 = vpop.eup %3076  ;;  %v994_v55 = vmul.f32 %v3075_v46, %v3067_v27  ;;  %2498 = vmatmul.mubr.msk.f32.vlgmr.msra.gmra.mrb[6].mxu1 %vm259_vm1, %v3572_v30  ;;  %2508 = vmatmul.mubr.msk.f32.vlgmr.msra.gmra.mrb[6].mxu0 %vm259_vm1, %v3572_v30  ;;  %v2841_v27 = vpack.c.bf16 %v1369_v20, %v1365_v19  ;;  %v2941_v46 = vpack.c.bf16 %v1972_v37, %v1968_v36  ;;  %v1366_v19 = vld [vmem:[#allocation7 + $0x710] sm:$0xff] }
 0x2c9   :  { %v993_v61 = vmul.f32 %v3077_v53, %v610_v44  ;;  %2828 = vmatpush1.bf16.msra.mxu1 %v2827_v40  ;;  %2924 = vmatpush1.bf16.msra.mxu0 %v2923_v41  ;;  %v2939_v40 = vpack.c.bf16 %v1963_v31, %v1959_v29  ;;  %v1372_v41 = vld [vmem:[#allocation7 + $0x740] sm:$0xff]  ;;  %v2845_v44 = vpack.c.bf16 %v1377_v34, %v1373_v32  ;;  %v1980_v53 = vld [vmem:[#allocation7 + $0xaa8] sm:$0xff]  ;;  %v1370_v20 = vld [vmem:[#allocation7 + $0x730] sm:$0xff] }
 0x2ca   :  { %2830 = vmatprep.subr.bf16.mxu1 %v2829_v48  ;;  %2926 = vmatprep.subr.bf16.mxu0 %v2925_v49  ;;  %v3079_v38 = vpop.eup %3078  ;;  %v1967_v48 = vld [vmem:[#allocation7 + $0xa40] sm:$0xff]  ;;  %v2859_v29 = vpack.c.bf16 %v1370_v20, %v1366_v19  ;;  %v1374_v32 = vld [vmem:[#allocation7 + $0x750] sm:$0xff]  ;;  %v2861_v36 = vpack.c.bf16 %v1379_v26, %v1375_v25  ;;  %v2211_v19 = vld [vmem:[#allocation10 + $0x78] sm:$0xff] }
 0x2cb   :  { %v995_v58 = vadd.f32 %v994_v55, %v993_v61  ;;  %1357 = vmatprep.mubr.f32.mxu1 %v3295_v8  ;;  %1952 = vmatprep.mubr.f32.mxu0 %v3295_v8  ;;  %v1971_v49 = vld [vmem:[#allocation7 + $0xa60] sm:$0xff]  ;;  %v2847_v55 = vpack.c.bf16 %v1376_v42, %v1372_v41  ;;  %v2849_v61 = vpack.c.bf16 %v1385_v51, %v1381_v50  ;;  %v1378_v34 = vld [vmem:[#allocation7 + $0x770] sm:$0xff]  ;;  %v1387_v41 = vld [vmem:[#allocation7 + $0x7b8] sm:$0xff] }
 0x2cc   :  { %v2943_v56 = vpack.c.bf16 %v1971_v49, %v1967_v48  ;;  %v1978_v42 = vld [vmem:[#allocation7 + $0xa98] sm:$0xff]  ;;  %v1382_v48 = vld [vmem:[#allocation7 + $0x790] sm:$0xff] }
 0x2cd   :  { %999 = vrot.lane.b32.xlu1 %v995_v58, %s3282_s3  ;;  %3080 = vtanh.f32 %v995_v58  ;;  %2832 = vmatpush1.bf16.msra.mxu1 %v2831_v57  ;;  %v2945_v57 = vpack.c.bf16 %v1980_v53, %v1976_v52  ;;  %v1393_v58 = vld [vmem:[#allocation7 + $0x7e8] sm:$0xff]  ;;  %v1386_v49 = vld [vmem:[#allocation7 + $0x7b0] sm:$0xff] }
 0x2ce   :  { %2928 = vmatpush1.bf16.msra.mxu0 %v2927_v62  ;;  %2834 = vmatprep.subr.bf16.mxu1 %v2833_v2  ;;  %v1975_v62 = vld [vmem:[#allocation7 + $0xa80] sm:$0xff]  ;;  %v1984_v2 = vld [vmem:[#allocation7 + $0xac8] sm:$0xff]  ;;  %v2853_v11 = vpack.c.bf16 %v1393_v58, %v1389_v0  ;;  %v1977_v52 = vld [vmem:[#allocation7 + $0xa90] sm:$0xff]  ;;  %v2965_v0 = vpack.c.bf16 %v1990_v60, %v1986_v59 }
 0x2cf   :  { %2930 = vmatprep.subr.bf16.mxu0 %v2929_v3  ;;  %v1988_v3 = vld [vmem:[#allocation7 + $0xae8] sm:$0xff]  ;;  %v2947_v5 = vpack.c.bf16 %v1979_v63, %v1975_v62  ;;  %v1981_v53 = vld [vmem:[#allocation7 + $0xab0] sm:$0xff] }
 0x2d0   :  { %v2949_v12 = vpack.c.bf16 %v1988_v3, %v1984_v2  ;;  %v1390_v62 = vld [vmem:[#allocation7 + $0x7d0] sm:$0xff] }
 0x2d1   :  { %2836 = vmatpush1.bf16.msra.mxu1 %v2835_v13  ;;  %v1983_v13 = vld [vmem:[#allocation7 + $0xac0] sm:$0xff]  ;;  %v1394_v58 = vld [vmem:[#allocation7 + $0x7f0] sm:$0xff] }
 0x2d2   :  { %2932 = vmatpush1.bf16.msra.mxu0 %v2931_v6  ;;  %2838 = vmatprep.subr.bf16.mxu1 %v2837_v16  ;;  %v1987_v6 = vld [vmem:[#allocation7 + $0xae0] sm:$0xff]  ;;  %v1962_v16 = vld [vmem:[#allocation7 + $0xa18] sm:$0xff]  ;;  %v1985_v2 = vld [vmem:[#allocation7 + $0xad0] sm:$0xff] }
 0x2d3   :  { %2934 = vmatprep.subr.bf16.mxu0 %v2933_v17  ;;  %v1966_v17 = vld [vmem:[#allocation7 + $0xa38] sm:$0xff]  ;;  %v2951_v18 = vpack.c.bf16 %v1987_v6, %v1983_v13  ;;  %v1989_v3 = vld [vmem:[#allocation7 + $0xaf0] sm:$0xff] }
 0x2d4   :  { %v2953_v22 = vpack.c.bf16 %v1966_v17, %v1962_v16  ;;  %v2204_v13 = vld [vmem:[#allocation10 + $0x40] sm:$0xff]  ;;  %v2205_v6 = vld [vmem:[#allocation10 + $0x48] sm:$0xff] }
 0x2d5   :  { %2840 = vmatpush1.bf16.msra.mxu1 %v2839_v23  ;;  %v1961_v23 = vld [vmem:[#allocation7 + $0xa10] sm:$0xff]  ;;  %v2970_v14 = vpack.c.bf16 %v2205_v6, %v2204_v13 }
 0x2d6   :  { %2936 = vmatpush1.bf16.msra.mxu0 %v2935_v24  ;;  %2842 = vmatprep.subr.bf16.mxu1 %v2841_v27  ;;  %v1965_v24 = vld [vmem:[#allocation7 + $0xa30] sm:$0xff]  ;;  %v1970_v27 = vld [vmem:[#allocation7 + $0xa58] sm:$0xff] }
 0x2d7   :  { %v3081_v43 = vpop.eup %3080  ;;  %2938 = vmatprep.subr.bf16.mxu0 %v2937_v28  ;;  %v1974_v28 = vld [vmem:[#allocation7 + $0xa78] sm:$0xff]  ;;  %v2955_v31 = vpack.c.bf16 %v1965_v24, %v1961_v23  ;;  %v2208_v17 = vld [vmem:[#allocation10 + $0x60] sm:$0xff] }
 0x2d8   :  { %v3581_v54 = vmul.f32 %v3081_v43, %v3079_v38  ;;  %2499 = vmatmul.mubr.msk.f32.vlgmr.msra.gmra.mrb[8].mxu1 %vm259_vm1, %v3572_v30  ;;  %v2957_v37 = vpack.c.bf16 %v1974_v28, %v1970_v27  ;;  %v1969_v38 = vld [vmem:[#allocation7 + $0xa50] sm:$0xff]  ;;  %v1982_v43 = vld [vmem:[#allocation7 + $0xab8] sm:$0xff] }
 0x2d9   :  { %2509 = vmatmul.mubr.msk.f32.vlgmr.msra.gmra.mrb[8].mxu0 %vm259_vm1, %v3572_v30  ;;  %2844 = vmatpush1.bf16.msra.mxu1 %v2843_v39  ;;  %v1973_v39 = vld [vmem:[#allocation7 + $0xa70] sm:$0xff]  ;;  %v2961_v51 = vpack.c.bf16 %v1982_v43, %v1978_v42 }
 0x2da   :  { %2940 = vmatpush1.bf16.msra.mxu0 %v2939_v40  ;;  %2846 = vmatprep.subr.bf16.mxu1 %v2845_v44  ;;  %v1383_v40 = vld [vmem:[#allocation7 + $0x798] sm:$0xff]  ;;  %v2863_v44 = vpack.c.bf16 %v1378_v34, %v1374_v32 }
 0x2db   :  { %2942 = vmatprep.subr.bf16.mxu0 %v2941_v46  ;;  %1463 = vmatprep.mubr.f32.mxu1 %v3295_v8  ;;  %v2959_v46 = vpack.c.bf16 %v1973_v39, %v1969_v38  ;;  %v2865_v50 = vpack.c.bf16 %v1387_v41, %v1383_v40 }
 0x2dc   :  { %2055 = vmatprep.mubr.f32.mxu0 %v3295_v8 }
 0x2dd   :  { %2848 = vmatpush1.bf16.msra.mxu1 %v2847_v55  ;;  %v1391_v55 = vld [vmem:[#allocation7 + $0x7d8] sm:$0xff] }
 0x2de   :  { %2944 = vmatpush1.bf16.msra.mxu0 %v2943_v56  ;;  %2850 = vmatprep.subr.bf16.mxu1 %v2849_v61  ;;  %v1395_v56 = vld [vmem:[#allocation7 + $0x7f8] sm:$0xff]  ;;  %v2867_v61 = vpack.c.bf16 %v1386_v49, %v1382_v48 }
 0x2df   :  { %2946 = vmatprep.subr.bf16.mxu0 %v2945_v57  ;;  %v2963_v57 = vpack.c.bf16 %v1981_v53, %v1977_v52  ;;  %v2869_v63 = vpack.c.bf16 %v1395_v56, %v1391_v55 }
 0x2e1   :  { %2852 = vmatpush1.bf16.msra.mxu1 %v2851_v4  ;;  %v2871_v4 = vpack.c.bf16 %v1394_v58, %v1390_v62 }
 0x2e2   :  { %2948 = vmatpush1.bf16.msra.mxu0 %v2947_v5  ;;  %2854 = vmatprep.subr.bf16.mxu1 %v2853_v11  ;;  %v2967_v5 = vpack.c.bf16 %v1989_v3, %v1985_v2 }
 0x2e3   :  { %2950 = vmatprep.subr.bf16.mxu0 %v2949_v12 }
 0x2e5   :  { %2856 = vmatpush1.bf16.msra.mxu1 %v2855_v7  ;;  %v2209_v7 = vld [vmem:[#allocation10 + $0x68] sm:$0xff] }
 0x2e6   :  { %2952 = vmatpush1.bf16.msra.mxu0 %v2951_v18  ;;  %2858 = vmatprep.subr.bf16.mxu1 %v2857_v21  ;;  %v2976_v18 = vpack.c.bf16 %v2209_v7, %v2208_v17  ;;  %v1546_v21 = vld [vmem:[#allocation8 + $0x8] sm:$0xf] }
 0x2e7   :  { %2954 = vmatprep.subr.bf16.mxu0 %v2953_v22  ;;  %v2138_v22 = vld [vmem:[#allocation8 + $0xc] sm:$0xf]  ;;  %v1551_v23 = vrot.slane %v1546_v21, %v3553_v33  ;;  %v1555_v25 = vrot.slane %v1546_v21, %v3555_v35  ;;  %v1563_v49 = vrot.slane %v1546_v21, %v3562_v47 }
 0x2e8   :  { %2500 = vmatmul.mubr.msk.f32.vlgmr.msra.gmra.mrb[6].mxu1 %vm259_vm1, %v3581_v54  ;;  %v2143_v24 = vrot.slane %v2138_v22, %v3553_v33  ;;  %v2147_v26 = vrot.slane %v2138_v22, %v3555_v35  ;;  %v1559_v33 = vrot.slane %v1546_v21, %v3559_v45  ;;  %v2151_v35 = vrot.slane %v2138_v22, %v3559_v45 }
 0x2e9   :  { %2510 = vmatmul.mubr.msk.f32.vlgmr.msra.gmra.mrb[6].mxu0 %vm259_vm1, %v3581_v54  ;;  %2860 = vmatpush1.bf16.msra.mxu1 %v2859_v29  ;;  %v2155_v59 = vrot.slane %v2138_v22, %v3562_v47 }
 0x2ea   :  { %2956 = vmatpush1.bf16.msra.mxu0 %v2955_v31  ;;  %2862 = vmatprep.subr.bf16.mxu1 %v2861_v36 }
 0x2eb   :  { %2958 = vmatprep.subr.bf16.mxu0 %v2957_v37  ;;  %1534 = vmatprep.mubr.f32.mxu1 %v3295_v8 }
 0x2ec   :  { %2126 = vmatprep.mubr.f32.mxu0 %v3295_v8 }
 0x2ed   :  { %2864 = vmatpush1.bf16.msra.mxu1 %v2863_v44 }
 0x2ee   :  { %2960 = vmatpush1.bf16.msra.mxu0 %v2959_v46  ;;  %2866 = vmatprep.subr.bf16.mxu1 %v2865_v50 }
 0x2ef   :  { %2962 = vmatprep.subr.bf16.mxu0 %v2961_v51 }
 0x2f1   :  { %2868 = vmatpush1.bf16.msra.mxu1 %v2867_v61 }
 0x2f2   :  { %2964 = vmatpush1.bf16.msra.mxu0 %v2963_v57  ;;  %2870 = vmatprep.subr.bf16.mxu1 %v2869_v63 }
 0x2f3   :  { %2966 = vmatprep.subr.bf16.mxu0 %v2965_v0 }
 0x2f5   :  { %2872 = vmatpush1.bf16.msra.mxu1 %v2871_v4  ;;  %v1008_v4 = vld [vmem:[#allocation5 + $0x10] sm:$0xff] }
 0x2f6   :  { %2968 = vmatpush1.bf16.msra.mxu0 %v2967_v5  ;;  %2969 = vmatprep.subr.bf16.mxu1 %v3293_v1  ;;  %v1606_v5 = vld [vmem:[#allocation5 + $0x18] sm:$0xff] }
 0x2f7   :  { %2993 = vmatprep.subr.bf16.mxu0 %v3293_v1 }
 0x2f8   :  { %2501 = vmatmul.mubr.msk.f32.vlgmr.msra.gmra.mrb[8].mxu1 %vm259_vm1, %v3581_v54 }
 0x2f9   :  { %2511 = vmatmul.mubr.msk.f32.vlgmr.msra.gmra.mrb[8].mxu0 %vm259_vm1, %v3581_v54  ;;  %2616 = vmatprep.mubr.msk.f32.mxu1 %vm3294_vm0, %v3295_v8 }
 0x2fa   :  { %2654 = vmatprep.mubr.msk.f32.mxu0 %vm3294_vm0, %v3295_v8  ;;  %2971 = vmatpush3.bf16.msra.mxu1 %v2970_v14 }
 0x2fb   :  { %2972 = vmatprep.subr.bf16.mxu1 %v3293_v1 }
 0x32d   :  { %v603_v9 = vpop.permute.xlu0 %602 }
 0x32e   :  { %v605_v10 = vsel %vm259_vm1, %v3572_v30, %v603_v9  ;;  %v2207_v30 = vld [vmem:[#allocation10 + $0x58] sm:$0xff] }
 0x32f   :  { %606 = vst [vmem:[%s3669_s9] sm:$0xff] %v605_v10  ;;  %v2973_v16 = vpack.c.bf16 %v2207_v30, %v2206_v15 }
 0x331   :  { %2974 = vmatpush3.bf16.msra.mxu1 %v2973_v16 }
 0x332   :  { %2975 = vmatprep.subr.bf16.mxu1 %v3293_v1 }
 0x335   :  { %2977 = vmatpush3.bf16.msra.mxu1 %v2976_v18 }
 0x336   :  { %2978 = vmatprep.subr.bf16.mxu1 %v3293_v1 }
 0x33f   :  { %v1000_v11 = vpop.permute.xlu1 %999 }
 0x340   :  { %v1002_v12 = vsel %vm259_vm1, %v3581_v54, %v1000_v11  ;;  %v2210_v54 = vld [vmem:[#allocation10 + $0x70] sm:$0xff] }
 0x341   :  { %2495 = vst [vmem:[%s3669_s9 + $0x8] sm:$0xff] %v1002_v12  ;;  %v2979_v20 = vpack.c.bf16 %v2211_v19, %v2210_v54  ;;  %v2195_v54 = vld [vmem:[#allocation10] sm:$0xff]  ;;  %v2196_v19 = vld [vmem:[#allocation10 + $0x8] sm:$0xff] }
 0x343   :  { %2980 = vmatpush3.bf16.msra.mxu1 %v2979_v20 }
 0x344   :  { %2981 = vmatprep.subr.bf16.mxu1 %v3293_v1 }
 0x3bb   :  { %v1465_v27 = vpop.f32.mrb[6].mxu1 }
 0x3bc   :  { %v2057_v28 = vpop.f32.mrb[6].mxu0  ;;  %v1568_v29 = vadd.f32 %v1551_v23, %v1465_v27  ;;  %v1467_v32 = vpop.f32.mrb[7].mxu1  ;;  %v2982_v23 = vpack.c.bf16 %v2196_v19, %v2195_v54  ;;  %v2198_v27 = vld [vmem:[#allocation10 + $0x18] sm:$0xff] }
 0x3bd   :  { %v2160_v31 = vadd.f32 %v2143_v24, %v2057_v28  ;;  %v2059_v34 = vpop.f32.mrb[7].mxu0  ;;  %v1569_v36 = vadd.f32 %v1555_v25, %v1467_v32 }
 0x3be   :  { %v2161_v37 = vadd.f32 %v2147_v26, %v2059_v34  ;;  %v2502_v38 = vmul.f32 -1.442695, %v1568_v29  ;;  %v2197_v26 = vld [vmem:[#allocation10 + $0x10] sm:$0xff]  ;;  %v2199_v29 = vld [vmem:[#allocation10 + $0x20] sm:$0xff] }
 0x3bf   :  { %v2512_v39 = vmul.f32 -1.442695, %v2160_v31  ;;  %v2503_v40 = vmul.f32 -1.442695, %v1569_v36  ;;  %v2985_v28 = vpack.c.bf16 %v2198_v27, %v2197_v26  ;;  %v2200_v31 = vld [vmem:[#allocation10 + $0x28] sm:$0xff]  ;;  %v2201_v34 = vld [vmem:[#allocation10 + $0x30] sm:$0xff] }
 0x3c0   :  { %v2513_v41 = vmul.f32 -1.442695, %v2161_v37  ;;  %3082 = vpow2.f32 %v2502_v38  ;;  %v2988_v32 = vpack.c.bf16 %v2200_v31, %v2199_v29  ;;  %v2202_v36 = vld [vmem:[#allocation10 + $0x38] sm:$0xff]  ;;  %v2367_v38 = vld [vmem:[#allocation10 + $0x80] sm:$0xff] }
 0x3c1   :  { %3084 = vpow2.f32 %v2512_v39  ;;  %v2991_v37 = vpack.c.bf16 %v2202_v36, %v2201_v34  ;;  %v2368_v39 = vld [vmem:[#allocation10 + $0x88] sm:$0xff] }
 0x3c2   :  { %3086 = vpow2.f32 %v2503_v40  ;;  %v2994_v40 = vpack.c.bf16 %v2368_v39, %v2367_v38 }
 0x3c3   :  { %3088 = vpow2.f32 %v2513_v41  ;;  %v2370_v41 = vld [vmem:[#allocation10 + $0x98] sm:$0xff] }
 0x3c4   :  { %2995 = vmatpush3.bf16.msra.mxu0 %v2994_v40 }
 0x3c5   :  { %2996 = vmatprep.subr.bf16.mxu0 %v3293_v1 }
 0x3ca   :  { %v3083_v42 = vpop.eup %3082 }
 0x3cb   :  { %v3085_v43 = vpop.eup %3084  ;;  %v1581_v44 = vadd.f32 1.0, %v3083_v42  ;;  %v1536_v46 = vpop.f32.mrb[8].mxu1  ;;  %v2372_v42 = vld [vmem:[#allocation10 + $0xa8] sm:$0xff] }
 0x3cc   :  { %v2128_v48 = vpop.f32.mrb[8].mxu0  ;;  %v3087_v50 = vpop.eup %3086  ;;  %v2173_v51 = vadd.f32 1.0, %v3085_v43  ;;  %v1570_v52 = vadd.f32 %v1559_v33, %v1536_v46  ;;  %v2374_v46 = vld [vmem:[#allocation10 + $0xb8] sm:$0xff] }
 0x3cd   :  { %v2162_v53 = vadd.f32 %v2151_v35, %v2128_v48  ;;  %v1538_v55 = vpop.f32.mrb[9].mxu1  ;;  %v2130_v56 = vpop.f32.mrb[9].mxu0  ;;  %3090 = vrcp.f32 %v1581_v44  ;;  %v1582_v61 = vadd.f32 1.0, %v3087_v50  ;;  %v2371_v35 = vld [vmem:[#allocation10 + $0xa0] sm:$0xff]  ;;  %v2373_v44 = vld [vmem:[#allocation10 + $0xb0] sm:$0xff] }
 0x3ce   :  { %v3089_v60 = vpop.eup %3088  ;;  %3092 = vrcp.f32 %v2173_v51  ;;  %v2504_v57 = vmul.f32 -1.442695, %v1570_v52  ;;  %v1571_v63 = vadd.f32 %v1563_v49, %v1538_v55  ;;  %v2163_v0 = vadd.f32 %v2155_v59, %v2130_v56  ;;  %v2518_v56 = vld [vmem:[#allocation11] ss:$0 sm:$0xff] }
 0x3cf   :  { %v2174_v45 = vadd.f32 1.0, %v3089_v60  ;;  %v2514_v62 = vmul.f32 -1.442695, %v2162_v53  ;;  %3094 = vrcp.f32 %v1582_v61  ;;  %v3000_v43 = vpack.c.bf16 %v2372_v42, %v2371_v35 }
 0x3d0   :  { %v3003_v48 = vpack.c.bf16 %v2374_v46, %v2373_v44 }
 0x3d1   :  { %3096 = vrcp.f32 %v2174_v45  ;;  %v2519_v45 = vld [vmem:[#allocation11 + $0x1] ss:$0 sm:$0xff] }
 0x3d2   :  { %3098 = vpow2.f32 %v2504_v57 }
 0x3d3   :  { %3100 = vpow2.f32 %v2514_v62 }
 0x3d4   :  { %3102 = vtanh.f32 %v1571_v63 }
 0x3d5   :  { %3104 = vtanh.f32 %v2163_v0 }
 0x3d7   :  { %v3091_v58 = vpop.eup %3090 }
 0x3d8   :  { %v3093_v2 = vpop.eup %3092 }
 0x3d9   :  { %v3095_v3 = vpop.eup %3094 }
 0x3da   :  { %v1591_v12 = vmul.f32 %v3095_v3, %v1008_v4 }
 0x3db   :  { %v3097_v47 = vpop.eup %3096 }
 0x3dc   :  { %v3099_v9 = vpop.eup %3098  ;;  %v2183_v14 = vmul.f32 %v3097_v47, %v1606_v5 }
 0x3dd   :  { %v3101_v10 = vpop.eup %3100  ;;  %v1583_v11 = vadd.f32 1.0, %v3099_v9 }
 0x3de   :  { %v3103_v13 = vpop.eup %3102  ;;  %v2175_v6 = vadd.f32 1.0, %v3101_v10 }
 0x3df   :  { %v3105_v15 = vpop.eup %3104  ;;  %v1592_v30 = vmul.f32 %v3103_v13, %v3091_v58  ;;  %3106 = vrcp.f32 %v1583_v11 }
 0x3e0   :  { %v2184_v16 = vmul.f32 %v3105_v15, %v3093_v2  ;;  %3108 = vrcp.f32 %v2175_v6 }
 0x3e1   :  { %v1593_v17 = vadd.f32 %v1592_v30, %v1591_v12 }
 0x3e2   :  { %v2185_v7 = vadd.f32 %v2184_v16, %v2183_v14 }
 0x3e3   :  { %1597 = vrot.lane.b32.xlu1 %v1593_v17, %s3282_s3  ;;  %3110 = vtanh.f32 %v1593_v17 }
 0x3e4   :  { %2189 = vrot.lane.b32.xlu0 %v2185_v7, %s3282_s3  ;;  %3112 = vtanh.f32 %v2185_v7 }
 0x3e9   :  { %v3107_v18 = vpop.eup %3106 }
 0x3ea   :  { %v3109_v20 = vpop.eup %3108 }
 0x3ed   :  { %v3111_v21 = vpop.eup %3110 }
 0x3ee   :  { %v3113_v22 = vpop.eup %3112  ;;  %v1595_v24 = vmul.f32 %v3111_v21, %v3107_v18 }
 0x3ef   :  { %v2187_v25 = vmul.f32 %v3113_v22, %v3109_v20 }
 0x3f1   :  { %2617 = vmatmul.mubr.msk.f32.vlgmr.msra.gmra.mrb[10].mxu1 %vm259_vm1, %v2187_v25 }
 0x3f2   :  { %2983 = vmatpush3.bf16.msra.mxu1 %v2982_v23  ;;  %2635 = vmatprep.mubr.msk.f32.mxu1 %vm3294_vm0, %v3295_v8  ;;  %v2369_v8 = vld [vmem:[#allocation10 + $0x90] sm:$0xff] }
 0x3f3   :  { %2984 = vmatprep.subr.bf16.mxu1 %v3293_v1  ;;  %v2997_v33 = vpack.c.bf16 %v2370_v41, %v2369_v8 }
 0x3f5   :  { %2998 = vmatpush3.bf16.msra.mxu0 %v2997_v33 }
 0x3f6   :  { %2986 = vmatpush3.bf16.msra.mxu1 %v2985_v28  ;;  %2999 = vmatprep.subr.bf16.mxu0 %v3293_v1 }
 0x3f7   :  { %2987 = vmatprep.subr.bf16.mxu1 %v3293_v1 }
 0x3f9   :  { %3001 = vmatpush3.bf16.msra.mxu0 %v3000_v43 }
 0x3fa   :  { %2989 = vmatpush3.bf16.msra.mxu1 %v2988_v32  ;;  %3002 = vmatprep.subr.bf16.mxu0 %v3293_v1 }
 0x3fb   :  { %2990 = vmatprep.subr.bf16.mxu1 %v3293_v1 }
 0x3fd   :  { %3004 = vmatpush3.bf16.msra.mxu0 %v3003_v48 }
 0x3fe   :  { %2992 = vmatpush3.bf16.msra.mxu1 %v2991_v37 }
 0x401   :  { %2636 = vmatmul.mubr.msk.f32.vlgmr.msra.gmra.mrb[12].mxu1 %vm259_vm1, %v1595_v24 }
 0x455   :  { %v1598_v49 = vpop.permute.xlu1 %1597 }
 0x456   :  { %v2190_v50 = vpop.permute.xlu0 %2189  ;;  %v1600_v51 = vsel %vm259_vm1, %v1595_v24, %v1598_v49 }
 0x457   :  { %v2192_v52 = vsel %vm259_vm1, %v2187_v25, %v2190_v50  ;;  %2505 = vst [vmem:[%s3669_s9 + $0x10] sm:$0xff] %v1600_v51 }
 0x458   :  { %2515 = vst [vmem:[%s3669_s9 + $0x18] sm:$0xff] %v2192_v52 }
 0x4c4   :  { %v2281_v53 = vpop.f32.mrb[10].mxu1 }
 0x4c5   :  { %v2618_v1 = vpop.f32.mrb[11].mxu1 }
 0x4d4   :  { %v2354_v55 = vpop.f32.mrb[12].mxu1 }
 0x4d5   :  { %v2355_v59 = vadd.f32 %v2354_v55, %v2281_v53  ;;  %v2637_v60 = vpop.f32.mrb[13].mxu1 }
 0x4d7   :  { %v2365_v61 = vadd.f32 %v2518_v56, %v2355_v59 }
 0x4d9   :  { %2655 = vmatmul.mubr.msk.f32.vlgmr.msra.gmra.mrb[10].mxu0 %vm259_vm1, %v2365_v61 }
 0x5ac   :  { %v2452_v57 = vpop.f32.mrb[10].mxu0 }
 0x5ad   :  { %v2453_v62 = vadd.f32 %v2519_v45, %v2452_v57  ;;  %v2656_v63 = vpop.f32.mrb[11].mxu0 }
 0x5af   :  { %2456 = vst [vmem:[#allocation13] sm:$0xff] %v2453_v62 }
 0x5b0   :  { %3257 = shalt.err (!%p3254_p10)
}
 0x5b1   :  { %s3258_s16 = scalar_lea.hbm %s3668_s8, 128 }
 0x5b2   :  { %p3259_p11 = scmp.ne.s32.totalorder %s3668_s8, %s3258_s16  ;;  %p3262_p12 = scmp.lt.u32.totalorder %s3258_s16, %s3668_s8 }
 0x5b4   :  { %p3264_p13 = pnand %p3262_p12, %p3259_p11 }
 0x5b6   :  { %3267 = shalt.err (!%p3264_p13)
}
 0x5b7   :  { %2466 = dma.vmem_to_hbm [thread:$0]  %s2464_s10, 128, %s3668_s8, [#allocation4]  }
 0x5b8   :  { %3276 = dma.done.wait [#allocation4], 128  }
 0x5b9   :  { %3277 = vsyncadd [#allocation4], 4294967168 }
 0x5ba   :  { %2474 = vsyncpa [#allocation3], 1 }
 0x5bb   :  { %2475 = vsyncpa [#allocation6], 1 }
 0x5bc   :  { %2476 = vsyncpa [#allocation9], 1 }
 0x5bd   :  { %2477 = vsyncpa [#allocation12], 1 }
 0x5be   :  { %2478 = vsyncpa [#allocation4], 1 }

</bundles_post_ra>
